<compile_context>
chip_gen: v7x
topology: tpu7x:2x2x1
jax: 0.10.0
libtpu: 0.0.40
codegen_flags: <defaults>
</compile_context>

<pallas_src>
import jax
import jax.numpy as jnp
from jax.experimental import pallas as pl
from jax.experimental.pallas import tpu as pltpu


def _add_kernel(a_ref, b_ref, o_ref):
    # Whole-tile elementwise add on the VPU.
    o_ref[...] = a_ref[...] + b_ref[...]


def _default_num_blocks() -> int:
    # Use a balanced 2-way split only on chips with 2 TensorCores (v7x);
    # on single-TC chips (v5e/v6e) one big block is strictly better.
    try:
        kind = jax.devices()[0].device_kind.lower()
        if "7" in kind:
            return 2
    except Exception:
        pass
    return 1


def pallas_add(x175: jax.Array, x172: jax.Array, *, num_blocks: int | None = None) -> jax.Array:
    assert x175.shape == x172.shape and x175.dtype == x172.dtype
    B, S, H = x175.shape

    if num_blocks is None:
        num_blocks = _default_num_blocks()

    rows_total = B * S
    # Fall back to a single block if the requested split doesn't tile cleanly.
    if rows_total % num_blocks != 0 or (rows_total // num_blocks) % 8 != 0:
        num_blocks = 1
    rows = rows_total // num_blocks

    # Squeeze the degenerate batch dim: process as (B*S, H) 2D slabs.
    a2 = x175.reshape(rows_total, H)
    b2 = x172.reshape(rows_total, H)

    spec = pl.BlockSpec((rows, H), lambda i: (i, 0))

    out2 = pl.pallas_call(
        _add_kernel,
        out_shape=jax.ShapeDtypeStruct((rows_total, H), x175.dtype),
        grid=(num_blocks,),
        in_specs=[spec, spec],
        out_specs=spec,
        compiler_params=pltpu.CompilerParams(
            dimension_semantics=("parallel",),
        ),
    )(a2, b2)

    return out2.reshape(B, S, H)


if __name__ == "__main__":
    key = jax.random.PRNGKey(0)
    k1, k2 = jax.random.split(key)
    # Shapes implied by the module's forward: (1, 384, 768) float32.
    x175 = jax.random.normal(k1, (1, 384, 768), dtype=jnp.float32)
    x172 = jax.random.normal(k2, (1, 384, 768), dtype=jnp.float32)

    out = pallas_add(x175, x172)
    out = jax.block_until_ready(out)

    # Correctness check against plain JAX reference.
    ref = x175 + x172
    assert out.shape == (1, 384, 768)
    assert out.dtype == jnp.float32
    assert jnp.allclose(out, ref, atol=1e-6, rtol=1e-6)

    print("KERNEL_OK")
</pallas_src>

<mosaic_0001>
module attributes {stable_mosaic.version = 11 : i64} {
  func.func @_add_kernel(%arg0: i32, %arg1: memref<384x768xf32, #tpu.memory_space<vmem>>, %arg2: memref<384x768xf32, #tpu.memory_space<vmem>>, %arg3: memref<384x768xf32, #tpu.memory_space<vmem>>) attributes {dimension_semantics = [#tpu.dimension_semantics<parallel>], iteration_bounds = array<i64: 1>, scalar_prefetch = 0 : i64, scratch_operands = 0 : i64, tpu.core_type = #tpu.core_type<tc>, window_params = [{transform_indices = @transform_0, window_bounds = array<i64: 384, 768>}, {transform_indices = @transform_1, window_bounds = array<i64: 384, 768>}, {transform_indices = @transform_2, window_bounds = array<i64: 384, 768>}]} {
    %c0 = arith.constant 0 : index
    %c0_0 = arith.constant 0 : index
    %0 = vector.load %arg1[%c0, %c0_0] : memref<384x768xf32, #tpu.memory_space<vmem>>, vector<384x768xf32>
    %c0_1 = arith.constant 0 : index
    %c0_2 = arith.constant 0 : index
    %1 = vector.load %arg2[%c0_1, %c0_2] : memref<384x768xf32, #tpu.memory_space<vmem>>, vector<384x768xf32>
    %2 = arith.addf %0, %1 : vector<384x768xf32>
    %c0_3 = arith.constant 0 : index
    %c0_4 = arith.constant 0 : index
    %3 = vector.load %arg3[%c0_3, %c0_4] : memref<384x768xf32, #tpu.memory_space<vmem>>, vector<384x768xf32>
    tpu.vector_store %arg3[%c0_3, %c0_4], %2 {strides = array<i32>} : memref<384x768xf32, #tpu.memory_space<vmem>>, vector<384x768xf32>,
    return
  }
  func.func @transform_0(%arg0: i32) -> (i32, i32) {
    %c0_i32 = arith.constant 0 : i32
    %c0_i32_0 = arith.constant 0 : i32
    return %arg0, %c0_i32 : i32, i32
  }
  func.func @transform_1(%arg0: i32) -> (i32, i32) {
    %c0_i32 = arith.constant 0 : i32
    %c0_i32_0 = arith.constant 0 : i32
    return %arg0, %c0_i32 : i32, i32
  }
  func.func @transform_2(%arg0: i32) -> (i32, i32) {
    %c0_i32 = arith.constant 0 : i32
    %c0_i32_0 = arith.constant 0 : i32
    return %arg0, %c0_i32 : i32, i32
  }
}

</mosaic_0001>

<bundles_post_ra>
// kernel: tpu_custom_call.1
= control target key start
LH: loop header
LB: loop body
LE: loop exit
PB: predicated region body
PF: predicated region fallthrough
CT: control target
= control target key end

     0   :  { %7 = vsyncpa [#allocation3], 0  ;;  %s1352_s0 = inlined_call_operand.hbm [shape: f32[384,768], index: 0, kind: input, shape index: {}]   ;;  %s1353_s1 = inlined_call_operand.hbm [shape: f32[384,768], index: 1, kind: input, shape index: {}]   ;;  %s1354_s2 = inlined_call_operand.hbm [shape: f32[384,768], index: 2, kind: output, shape index: {}]  }
   0x1   :  { %8 = vsyncpa [#allocation6], 0 }
   0x2   :  { %9 = vsyncpa [#allocation4], 0  ;;  %s1287_s9 = smov [#allocation2]   ;;  %s1215_s13 = scalar_lea.hbm %s1352_s0, 36864 }
   0x3   :  { %s15_s10 = sshll.u32 %s1287_s9, 4  ;;  %p1216_p0 = scmp.ne.s32.totalorder %s1352_s0, %s1215_s13  ;;  %s16_s10 = int_to_ptr.vmem [resolvable:$true] %s15_s10 }
   0x4   :  { %p1219_p1 = scmp.lt.u32.totalorder %s1215_s13, %s1352_s0 }
   0x6   :  { %p1221_p2 = pnand %p1219_p1, %p1216_p0 }
   0x8   :  { %1224 = shalt.err (!%p1221_p2)
}
   0x9   :  { %s1225_s18 = scalar_lea.vmem %s16_s10, 36864  ;;  %p1230_p4 = scmp.lt.s32.totalorder %s16_s10, %s16_s10 }
   0xa   :  { %p1226_p3 = scmp.ne.s32.totalorder %s16_s10, %s1225_s18  ;;  %p1231_p5 = scmp.lt.s32.totalorder %s1225_s18, %s1225_s18 }
   0xc   :  { %p1232_p6 = por %p1231_p5, %p1230_p4 }
   0xe   :  { %p1233_p7 = pnand %p1232_p6, %p1226_p3 }
  0x10   :  { %1236 = shalt.err (!%p1233_p7)
}
  0x11   :  { %s1288_s19 = smov 768   ;;  %s1289_s20 = smov 48  }
  0x12   :  { %21 = dma.hbm_to_vmem [thread:$0]  %s1352_s0, 36864, %s16_s10, [#allocation3], %s1288_s19, %s1288_s19, %s1289_s20  }
  0x13   :  { %s1290_s23 = smov [#allocation5]   ;;  %s1237_s27 = scalar_lea.hbm %s1353_s1, 36864 }
  0x14   :  { %s27_s24 = sshll.u32 %s1290_s23, 4  ;;  %p1238_p8 = scmp.ne.s32.totalorder %s1353_s1, %s1237_s27  ;;  %s28_s24 = int_to_ptr.vmem [resolvable:$true] %s27_s24 }
  0x15   :  { %p1241_p9 = scmp.lt.u32.totalorder %s1237_s27, %s1353_s1 }
  0x17   :  { %p1243_p10 = pnand %p1241_p9, %p1238_p8 }
  0x19   :  { %1246 = shalt.err (!%p1243_p10)
}
  0x1a   :  { %s1247_s4 = scalar_lea.vmem %s28_s24, 36864  ;;  %p1252_p12 = scmp.lt.s32.totalorder %s28_s24, %s28_s24 }
  0x1b   :  { %p1248_p11 = scmp.ne.s32.totalorder %s28_s24, %s1247_s4  ;;  %p1253_p13 = scmp.lt.s32.totalorder %s1247_s4, %s1247_s4 }
  0x1d   :  { %p1254_p0 = por %p1253_p13, %p1252_p12 }
  0x1f   :  { %p1255_p1 = pnand %p1254_p0, %p1248_p11 }
  0x21   :  { %1258 = shalt.err (!%p1255_p1)
}
  0x22   :  { %33 = dma.hbm_to_vmem [thread:$0]  %s1353_s1, 36864, %s28_s24, [#allocation6], %s1288_s19, %s1288_s19, %s1289_s20  }
  0x23   :  { %1281 = dma.done.wait [#allocation3], 36864  }
  0x24   :  { %1282 = vsyncadd [#allocation3], 4294930432 }
  0x25   :  { %1283 = dma.done.wait [#allocation6], 36864  }
  0x26   :  { %1284 = vsyncadd [#allocation6], 4294930432  ;;  %v40_v0 = vld [vmem:[#allocation2] sm:$0xff]  ;;  %v41_v2 = vld [vmem:[#allocation2 + $0x8] sm:$0xff]  ;;  %s1291_s1 = smov [#allocation7]  }
  0x27   :  { %v328_v1 = vld [vmem:[#allocation5] sm:$0xff]  ;;  %v329_v4 = vld [vmem:[#allocation5 + $0x8] sm:$0xff]  ;;  %v42_v5 = vld [vmem:[#allocation2 + $0x10] sm:$0xff]  ;;  %s1197_s6 = sshll.u32 %s1291_s1, 4  ;;  %s1198_s6 = int_to_ptr.vmem [resolvable:$true] %s1197_s6 }
  0x28   :  { %v616_v3 = vadd.f32 %v328_v1, %v40_v0  ;;  %v330_v6 = vld [vmem:[#allocation5 + $0x10] sm:$0xff]  ;;  %v617_v7 = vadd.f32 %v329_v4, %v41_v2  ;;  %v43_v9 = vld [vmem:[#allocation2 + $0x18] sm:$0xff]  ;;  %v44_v11 = vld [vmem:[#allocation2 + $0x20] sm:$0xff]  ;;  %s1259_s7 = scalar_lea.vmem %s1198_s6, 36864  ;;  %p1264_p3 = scmp.lt.s32.totalorder %s1198_s6, %s1198_s6 }
  0x29   :  { %v618_v8 = vadd.f32 %v330_v6, %v42_v5  ;;  %v331_v10 = vld [vmem:[#allocation5 + $0x18] sm:$0xff]  ;;  %v332_v13 = vld [vmem:[#allocation5 + $0x20] sm:$0xff]  ;;  %v45_v14 = vld [vmem:[#allocation2 + $0x28] sm:$0xff]  ;;  %p1260_p2 = scmp.ne.s32.totalorder %s1198_s6, %s1259_s7  ;;  %p1265_p4 = scmp.lt.s32.totalorder %s1259_s7, %s1259_s7 }
  0x2a   :  { %904 = vst [vmem:[#allocation7] sm:$0xff] %v616_v3  ;;  %v619_v12 = vadd.f32 %v331_v10, %v43_v9  ;;  %v333_v15 = vld [vmem:[#allocation5 + $0x28] sm:$0xff]  ;;  %905 = vst [vmem:[#allocation7 + $0x8] sm:$0xff] %v617_v7  ;;  %v620_v16 = vadd.f32 %v332_v13, %v44_v11  ;;  %v46_v18 = vld [vmem:[#allocation2 + $0x30] sm:$0xff] }
  0x2b   :  { %906 = vst [vmem:[#allocation7 + $0x10] sm:$0xff] %v618_v8  ;;  %v621_v17 = vadd.f32 %v333_v15, %v45_v14  ;;  %v334_v19 = vld [vmem:[#allocation5 + $0x30] sm:$0xff]  ;;  %v47_v20 = vld [vmem:[#allocation2 + $0x38] sm:$0xff]  ;;  %v48_v23 = vld [vmem:[#allocation2 + $0x40] sm:$0xff]  ;;  %p1266_p5 = por %p1265_p4, %p1264_p3 }
  0x2c   :  { %907 = vst [vmem:[#allocation7 + $0x18] sm:$0xff] %v619_v12  ;;  %v622_v21 = vadd.f32 %v334_v19, %v46_v18  ;;  %v335_v22 = vld [vmem:[#allocation5 + $0x38] sm:$0xff]  ;;  %v336_v24 = vld [vmem:[#allocation5 + $0x40] sm:$0xff]  ;;  %908 = vst [vmem:[#allocation7 + $0x20] sm:$0xff] %v620_v16 }
  0x2d   :  { %909 = vst [vmem:[#allocation7 + $0x28] sm:$0xff] %v621_v17  ;;  %v623_v25 = vadd.f32 %v335_v22, %v47_v20  ;;  %v624_v26 = vadd.f32 %v336_v24, %v48_v23  ;;  %v49_v27 = vld [vmem:[#allocation2 + $0x48] sm:$0xff]  ;;  %v50_v29 = vld [vmem:[#allocation2 + $0x50] sm:$0xff]  ;;  %v51_v32 = vld [vmem:[#allocation2 + $0x58] sm:$0xff]  ;;  %p1267_p6 = pnand %p1266_p5, %p1260_p2 }
  0x2e   :  { %v337_v28 = vld [vmem:[#allocation5 + $0x48] sm:$0xff]  ;;  %910 = vst [vmem:[#allocation7 + $0x30] sm:$0xff] %v622_v21  ;;  %v338_v31 = vld [vmem:[#allocation5 + $0x50] sm:$0xff]  ;;  %v339_v33 = vld [vmem:[#allocation5 + $0x58] sm:$0xff] }
  0x2f   :  { %v625_v30 = vadd.f32 %v337_v28, %v49_v27  ;;  %911 = vst [vmem:[#allocation7 + $0x38] sm:$0xff] %v623_v25  ;;  %912 = vst [vmem:[#allocation7 + $0x40] sm:$0xff] %v624_v26  ;;  %v626_v34 = vadd.f32 %v338_v31, %v50_v29  ;;  %v627_v35 = vadd.f32 %v339_v33, %v51_v32  ;;  %v52_v36 = vld [vmem:[#allocation2 + $0x60] sm:$0xff]  ;;  %v53_v38 = vld [vmem:[#allocation2 + $0x68] sm:$0xff] }
  0x30   :  { %v340_v37 = vld [vmem:[#allocation5 + $0x60] sm:$0xff]  ;;  %v341_v40 = vld [vmem:[#allocation5 + $0x68] sm:$0xff]  ;;  %v54_v41 = vld [vmem:[#allocation2 + $0x70] sm:$0xff] }
  0x31   :  { %913 = vst [vmem:[#allocation7 + $0x48] sm:$0xff] %v625_v30  ;;  %v628_v39 = vadd.f32 %v340_v37, %v52_v36  ;;  %v342_v42 = vld [vmem:[#allocation5 + $0x70] sm:$0xff]  ;;  %914 = vst [vmem:[#allocation7 + $0x50] sm:$0xff] %v626_v34  ;;  %v629_v43 = vadd.f32 %v341_v40, %v53_v38  ;;  %v55_v45 = vld [vmem:[#allocation2 + $0x78] sm:$0xff] }
  0x32   :  { %915 = vst [vmem:[#allocation7 + $0x58] sm:$0xff] %v627_v35  ;;  %v630_v44 = vadd.f32 %v342_v42, %v54_v41  ;;  %v343_v46 = vld [vmem:[#allocation5 + $0x78] sm:$0xff]  ;;  %v56_v47 = vld [vmem:[#allocation2 + $0x80] sm:$0xff]  ;;  %v57_v50 = vld [vmem:[#allocation2 + $0x88] sm:$0xff] }
  0x33   :  { %916 = vst [vmem:[#allocation7 + $0x60] sm:$0xff] %v628_v39  ;;  %v631_v48 = vadd.f32 %v343_v46, %v55_v45  ;;  %v344_v49 = vld [vmem:[#allocation5 + $0x80] sm:$0xff]  ;;  %v345_v51 = vld [vmem:[#allocation5 + $0x88] sm:$0xff]  ;;  %917 = vst [vmem:[#allocation7 + $0x68] sm:$0xff] %v629_v43 }
  0x34   :  { %918 = vst [vmem:[#allocation7 + $0x70] sm:$0xff] %v630_v44  ;;  %v632_v52 = vadd.f32 %v344_v49, %v56_v47  ;;  %v633_v53 = vadd.f32 %v345_v51, %v57_v50  ;;  %v58_v54 = vld [vmem:[#allocation2 + $0x90] sm:$0xff]  ;;  %v59_v56 = vld [vmem:[#allocation2 + $0x98] sm:$0xff]  ;;  %v60_v59 = vld [vmem:[#allocation2 + $0xa0] sm:$0xff] }
  0x35   :  { %v346_v55 = vld [vmem:[#allocation5 + $0x90] sm:$0xff]  ;;  %919 = vst [vmem:[#allocation7 + $0x78] sm:$0xff] %v631_v48  ;;  %v347_v58 = vld [vmem:[#allocation5 + $0x98] sm:$0xff]  ;;  %v348_v60 = vld [vmem:[#allocation5 + $0xa0] sm:$0xff] }
  0x36   :  { %v634_v57 = vadd.f32 %v346_v55, %v58_v54  ;;  %920 = vst [vmem:[#allocation7 + $0x80] sm:$0xff] %v632_v52  ;;  %921 = vst [vmem:[#allocation7 + $0x88] sm:$0xff] %v633_v53  ;;  %v635_v61 = vadd.f32 %v347_v58, %v59_v56  ;;  %v636_v62 = vadd.f32 %v348_v60, %v60_v59  ;;  %v61_v63 = vld [vmem:[#allocation2 + $0xa8] sm:$0xff]  ;;  %v62_v1 = vld [vmem:[#allocation2 + $0xb0] sm:$0xff] }
  0x37   :  { %v349_v0 = vld [vmem:[#allocation5 + $0xa8] sm:$0xff]  ;;  %v350_v3 = vld [vmem:[#allocation5 + $0xb0] sm:$0xff]  ;;  %v63_v4 = vld [vmem:[#allocation2 + $0xb8] sm:$0xff] }
  0x38   :  { %922 = vst [vmem:[#allocation7 + $0x90] sm:$0xff] %v634_v57  ;;  %v637_v2 = vadd.f32 %v349_v0, %v61_v63  ;;  %v351_v5 = vld [vmem:[#allocation5 + $0xb8] sm:$0xff]  ;;  %923 = vst [vmem:[#allocation7 + $0x98] sm:$0xff] %v635_v61  ;;  %v638_v6 = vadd.f32 %v350_v3, %v62_v1  ;;  %v64_v8 = vld [vmem:[#allocation2 + $0xc0] sm:$0xff] }
  0x39   :  { %924 = vst [vmem:[#allocation7 + $0xa0] sm:$0xff] %v636_v62  ;;  %v639_v7 = vadd.f32 %v351_v5, %v63_v4  ;;  %v352_v9 = vld [vmem:[#allocation5 + $0xc0] sm:$0xff]  ;;  %v65_v10 = vld [vmem:[#allocation2 + $0xc8] sm:$0xff]  ;;  %v66_v13 = vld [vmem:[#allocation2 + $0xd0] sm:$0xff] }
  0x3a   :  { %925 = vst [vmem:[#allocation7 + $0xa8] sm:$0xff] %v637_v2  ;;  %v640_v11 = vadd.f32 %v352_v9, %v64_v8  ;;  %v353_v12 = vld [vmem:[#allocation5 + $0xc8] sm:$0xff]  ;;  %v354_v14 = vld [vmem:[#allocation5 + $0xd0] sm:$0xff]  ;;  %926 = vst [vmem:[#allocation7 + $0xb0] sm:$0xff] %v638_v6 }
  0x3b   :  { %927 = vst [vmem:[#allocation7 + $0xb8] sm:$0xff] %v639_v7  ;;  %v641_v15 = vadd.f32 %v353_v12, %v65_v10  ;;  %v642_v16 = vadd.f32 %v354_v14, %v66_v13  ;;  %v67_v17 = vld [vmem:[#allocation2 + $0xd8] sm:$0xff]  ;;  %v68_v19 = vld [vmem:[#allocation2 + $0xe0] sm:$0xff]  ;;  %v69_v22 = vld [vmem:[#allocation2 + $0xe8] sm:$0xff] }
  0x3c   :  { %v355_v18 = vld [vmem:[#allocation5 + $0xd8] sm:$0xff]  ;;  %928 = vst [vmem:[#allocation7 + $0xc0] sm:$0xff] %v640_v11  ;;  %v356_v21 = vld [vmem:[#allocation5 + $0xe0] sm:$0xff]  ;;  %v357_v23 = vld [vmem:[#allocation5 + $0xe8] sm:$0xff] }
  0x3d   :  { %v643_v20 = vadd.f32 %v355_v18, %v67_v17  ;;  %929 = vst [vmem:[#allocation7 + $0xc8] sm:$0xff] %v641_v15  ;;  %930 = vst [vmem:[#allocation7 + $0xd0] sm:$0xff] %v642_v16  ;;  %v644_v24 = vadd.f32 %v356_v21, %v68_v19  ;;  %v645_v25 = vadd.f32 %v357_v23, %v69_v22  ;;  %v70_v26 = vld [vmem:[#allocation2 + $0xf0] sm:$0xff]  ;;  %v71_v28 = vld [vmem:[#allocation2 + $0xf8] sm:$0xff] }
  0x3e   :  { %v358_v27 = vld [vmem:[#allocation5 + $0xf0] sm:$0xff]  ;;  %v359_v30 = vld [vmem:[#allocation5 + $0xf8] sm:$0xff]  ;;  %v72_v31 = vld [vmem:[#allocation2 + $0x100] sm:$0xff] }
  0x3f   :  { %931 = vst [vmem:[#allocation7 + $0xd8] sm:$0xff] %v643_v20  ;;  %v646_v29 = vadd.f32 %v358_v27, %v70_v26  ;;  %v360_v32 = vld [vmem:[#allocation5 + $0x100] sm:$0xff]  ;;  %932 = vst [vmem:[#allocation7 + $0xe0] sm:$0xff] %v644_v24  ;;  %v647_v33 = vadd.f32 %v359_v30, %v71_v28  ;;  %v73_v35 = vld [vmem:[#allocation2 + $0x108] sm:$0xff] }
  0x40   :  { %933 = vst [vmem:[#allocation7 + $0xe8] sm:$0xff] %v645_v25  ;;  %v648_v34 = vadd.f32 %v360_v32, %v72_v31  ;;  %v361_v36 = vld [vmem:[#allocation5 + $0x108] sm:$0xff]  ;;  %v74_v37 = vld [vmem:[#allocation2 + $0x110] sm:$0xff]  ;;  %v75_v40 = vld [vmem:[#allocation2 + $0x118] sm:$0xff] }
  0x41   :  { %934 = vst [vmem:[#allocation7 + $0xf0] sm:$0xff] %v646_v29  ;;  %v649_v38 = vadd.f32 %v361_v36, %v73_v35  ;;  %v362_v39 = vld [vmem:[#allocation5 + $0x110] sm:$0xff]  ;;  %v363_v41 = vld [vmem:[#allocation5 + $0x118] sm:$0xff]  ;;  %935 = vst [vmem:[#allocation7 + $0xf8] sm:$0xff] %v647_v33 }
  0x42   :  { %936 = vst [vmem:[#allocation7 + $0x100] sm:$0xff] %v648_v34  ;;  %v650_v42 = vadd.f32 %v362_v39, %v74_v37  ;;  %v651_v43 = vadd.f32 %v363_v41, %v75_v40  ;;  %v76_v44 = vld [vmem:[#allocation2 + $0x120] sm:$0xff]  ;;  %v77_v46 = vld [vmem:[#allocation2 + $0x128] sm:$0xff]  ;;  %v78_v49 = vld [vmem:[#allocation2 + $0x130] sm:$0xff] }
  0x43   :  { %v364_v45 = vld [vmem:[#allocation5 + $0x120] sm:$0xff]  ;;  %937 = vst [vmem:[#allocation7 + $0x108] sm:$0xff] %v649_v38  ;;  %v365_v48 = vld [vmem:[#allocation5 + $0x128] sm:$0xff]  ;;  %v366_v50 = vld [vmem:[#allocation5 + $0x130] sm:$0xff] }
  0x44   :  { %v652_v47 = vadd.f32 %v364_v45, %v76_v44  ;;  %938 = vst [vmem:[#allocation7 + $0x110] sm:$0xff] %v650_v42  ;;  %939 = vst [vmem:[#allocation7 + $0x118] sm:$0xff] %v651_v43  ;;  %v653_v51 = vadd.f32 %v365_v48, %v77_v46  ;;  %v654_v52 = vadd.f32 %v366_v50, %v78_v49  ;;  %v79_v53 = vld [vmem:[#allocation2 + $0x138] sm:$0xff]  ;;  %v80_v55 = vld [vmem:[#allocation2 + $0x140] sm:$0xff] }
  0x45   :  { %v367_v54 = vld [vmem:[#allocation5 + $0x138] sm:$0xff]  ;;  %v368_v57 = vld [vmem:[#allocation5 + $0x140] sm:$0xff]  ;;  %v81_v58 = vld [vmem:[#allocation2 + $0x148] sm:$0xff] }
  0x46   :  { %940 = vst [vmem:[#allocation7 + $0x120] sm:$0xff] %v652_v47  ;;  %v655_v56 = vadd.f32 %v367_v54, %v79_v53  ;;  %v369_v59 = vld [vmem:[#allocation5 + $0x148] sm:$0xff]  ;;  %941 = vst [vmem:[#allocation7 + $0x128] sm:$0xff] %v653_v51  ;;  %v656_v60 = vadd.f32 %v368_v57, %v80_v55  ;;  %v82_v62 = vld [vmem:[#allocation2 + $0x150] sm:$0xff] }
  0x47   :  { %942 = vst [vmem:[#allocation7 + $0x130] sm:$0xff] %v654_v52  ;;  %v657_v61 = vadd.f32 %v369_v59, %v81_v58  ;;  %v370_v63 = vld [vmem:[#allocation5 + $0x150] sm:$0xff]  ;;  %v83_v0 = vld [vmem:[#allocation2 + $0x158] sm:$0xff]  ;;  %v84_v3 = vld [vmem:[#allocation2 + $0x160] sm:$0xff] }
  0x48   :  { %943 = vst [vmem:[#allocation7 + $0x138] sm:$0xff] %v655_v56  ;;  %v658_v1 = vadd.f32 %v370_v63, %v82_v62  ;;  %v371_v2 = vld [vmem:[#allocation5 + $0x158] sm:$0xff]  ;;  %v372_v4 = vld [vmem:[#allocation5 + $0x160] sm:$0xff]  ;;  %944 = vst [vmem:[#allocation7 + $0x140] sm:$0xff] %v656_v60 }
  0x49   :  { %945 = vst [vmem:[#allocation7 + $0x148] sm:$0xff] %v657_v61  ;;  %v659_v5 = vadd.f32 %v371_v2, %v83_v0  ;;  %v660_v6 = vadd.f32 %v372_v4, %v84_v3  ;;  %v85_v7 = vld [vmem:[#allocation2 + $0x168] sm:$0xff]  ;;  %v86_v9 = vld [vmem:[#allocation2 + $0x170] sm:$0xff]  ;;  %v87_v12 = vld [vmem:[#allocation2 + $0x178] sm:$0xff] }
  0x4a   :  { %v373_v8 = vld [vmem:[#allocation5 + $0x168] sm:$0xff]  ;;  %946 = vst [vmem:[#allocation7 + $0x150] sm:$0xff] %v658_v1  ;;  %v374_v11 = vld [vmem:[#allocation5 + $0x170] sm:$0xff]  ;;  %v375_v13 = vld [vmem:[#allocation5 + $0x178] sm:$0xff] }
  0x4b   :  { %v661_v10 = vadd.f32 %v373_v8, %v85_v7  ;;  %947 = vst [vmem:[#allocation7 + $0x158] sm:$0xff] %v659_v5  ;;  %948 = vst [vmem:[#allocation7 + $0x160] sm:$0xff] %v660_v6  ;;  %v662_v14 = vadd.f32 %v374_v11, %v86_v9  ;;  %v663_v15 = vadd.f32 %v375_v13, %v87_v12  ;;  %v88_v16 = vld [vmem:[#allocation2 + $0x180] sm:$0xff]  ;;  %v89_v18 = vld [vmem:[#allocation2 + $0x188] sm:$0xff] }
  0x4c   :  { %v376_v17 = vld [vmem:[#allocation5 + $0x180] sm:$0xff]  ;;  %v377_v20 = vld [vmem:[#allocation5 + $0x188] sm:$0xff]  ;;  %v90_v21 = vld [vmem:[#allocation2 + $0x190] sm:$0xff] }
  0x4d   :  { %949 = vst [vmem:[#allocation7 + $0x168] sm:$0xff] %v661_v10  ;;  %v664_v19 = vadd.f32 %v376_v17, %v88_v16  ;;  %v378_v22 = vld [vmem:[#allocation5 + $0x190] sm:$0xff]  ;;  %950 = vst [vmem:[#allocation7 + $0x170] sm:$0xff] %v662_v14  ;;  %v665_v23 = vadd.f32 %v377_v20, %v89_v18  ;;  %v91_v25 = vld [vmem:[#allocation2 + $0x198] sm:$0xff] }
  0x4e   :  { %951 = vst [vmem:[#allocation7 + $0x178] sm:$0xff] %v663_v15  ;;  %v666_v24 = vadd.f32 %v378_v22, %v90_v21  ;;  %v379_v26 = vld [vmem:[#allocation5 + $0x198] sm:$0xff]  ;;  %v92_v27 = vld [vmem:[#allocation2 + $0x1a0] sm:$0xff]  ;;  %v93_v30 = vld [vmem:[#allocation2 + $0x1a8] sm:$0xff] }
  0x4f   :  { %952 = vst [vmem:[#allocation7 + $0x180] sm:$0xff] %v664_v19  ;;  %v667_v28 = vadd.f32 %v379_v26, %v91_v25  ;;  %v380_v29 = vld [vmem:[#allocation5 + $0x1a0] sm:$0xff]  ;;  %v381_v31 = vld [vmem:[#allocation5 + $0x1a8] sm:$0xff]  ;;  %953 = vst [vmem:[#allocation7 + $0x188] sm:$0xff] %v665_v23 }
  0x50   :  { %954 = vst [vmem:[#allocation7 + $0x190] sm:$0xff] %v666_v24  ;;  %v668_v32 = vadd.f32 %v380_v29, %v92_v27  ;;  %v669_v33 = vadd.f32 %v381_v31, %v93_v30  ;;  %v94_v34 = vld [vmem:[#allocation2 + $0x1b0] sm:$0xff]  ;;  %v95_v36 = vld [vmem:[#allocation2 + $0x1b8] sm:$0xff]  ;;  %v96_v39 = vld [vmem:[#allocation2 + $0x1c0] sm:$0xff] }
  0x51   :  { %v382_v35 = vld [vmem:[#allocation5 + $0x1b0] sm:$0xff]  ;;  %955 = vst [vmem:[#allocation7 + $0x198] sm:$0xff] %v667_v28  ;;  %v383_v38 = vld [vmem:[#allocation5 + $0x1b8] sm:$0xff]  ;;  %v384_v40 = vld [vmem:[#allocation5 + $0x1c0] sm:$0xff] }
  0x52   :  { %v670_v37 = vadd.f32 %v382_v35, %v94_v34  ;;  %956 = vst [vmem:[#allocation7 + $0x1a0] sm:$0xff] %v668_v32  ;;  %957 = vst [vmem:[#allocation7 + $0x1a8] sm:$0xff] %v669_v33  ;;  %v671_v41 = vadd.f32 %v383_v38, %v95_v36  ;;  %v672_v42 = vadd.f32 %v384_v40, %v96_v39  ;;  %v97_v43 = vld [vmem:[#allocation2 + $0x1c8] sm:$0xff]  ;;  %v98_v45 = vld [vmem:[#allocation2 + $0x1d0] sm:$0xff] }
  0x53   :  { %v385_v44 = vld [vmem:[#allocation5 + $0x1c8] sm:$0xff]  ;;  %v386_v47 = vld [vmem:[#allocation5 + $0x1d0] sm:$0xff]  ;;  %v99_v48 = vld [vmem:[#allocation2 + $0x1d8] sm:$0xff] }
  0x54   :  { %958 = vst [vmem:[#allocation7 + $0x1b0] sm:$0xff] %v670_v37  ;;  %v673_v46 = vadd.f32 %v385_v44, %v97_v43  ;;  %v387_v49 = vld [vmem:[#allocation5 + $0x1d8] sm:$0xff]  ;;  %959 = vst [vmem:[#allocation7 + $0x1b8] sm:$0xff] %v671_v41  ;;  %v674_v50 = vadd.f32 %v386_v47, %v98_v45  ;;  %v100_v52 = vld [vmem:[#allocation2 + $0x1e0] sm:$0xff] }
  0x55   :  { %960 = vst [vmem:[#allocation7 + $0x1c0] sm:$0xff] %v672_v42  ;;  %v675_v51 = vadd.f32 %v387_v49, %v99_v48  ;;  %v388_v53 = vld [vmem:[#allocation5 + $0x1e0] sm:$0xff]  ;;  %v101_v54 = vld [vmem:[#allocation2 + $0x1e8] sm:$0xff]  ;;  %v102_v57 = vld [vmem:[#allocation2 + $0x1f0] sm:$0xff] }
  0x56   :  { %961 = vst [vmem:[#allocation7 + $0x1c8] sm:$0xff] %v673_v46  ;;  %v676_v55 = vadd.f32 %v388_v53, %v100_v52  ;;  %v389_v56 = vld [vmem:[#allocation5 + $0x1e8] sm:$0xff]  ;;  %v390_v58 = vld [vmem:[#allocation5 + $0x1f0] sm:$0xff]  ;;  %962 = vst [vmem:[#allocation7 + $0x1d0] sm:$0xff] %v674_v50 }
  0x57   :  { %963 = vst [vmem:[#allocation7 + $0x1d8] sm:$0xff] %v675_v51  ;;  %v677_v59 = vadd.f32 %v389_v56, %v101_v54  ;;  %v678_v60 = vadd.f32 %v390_v58, %v102_v57  ;;  %v103_v61 = vld [vmem:[#allocation2 + $0x1f8] sm:$0xff]  ;;  %v104_v63 = vld [vmem:[#allocation2 + $0x200] sm:$0xff]  ;;  %v105_v2 = vld [vmem:[#allocation2 + $0x208] sm:$0xff] }
  0x58   :  { %v391_v62 = vld [vmem:[#allocation5 + $0x1f8] sm:$0xff]  ;;  %964 = vst [vmem:[#allocation7 + $0x1e0] sm:$0xff] %v676_v55  ;;  %v392_v1 = vld [vmem:[#allocation5 + $0x200] sm:$0xff]  ;;  %v393_v3 = vld [vmem:[#allocation5 + $0x208] sm:$0xff] }
  0x59   :  { %v679_v0 = vadd.f32 %v391_v62, %v103_v61  ;;  %965 = vst [vmem:[#allocation7 + $0x1e8] sm:$0xff] %v677_v59  ;;  %966 = vst [vmem:[#allocation7 + $0x1f0] sm:$0xff] %v678_v60  ;;  %v680_v4 = vadd.f32 %v392_v1, %v104_v63  ;;  %v681_v5 = vadd.f32 %v393_v3, %v105_v2  ;;  %v106_v6 = vld [vmem:[#allocation2 + $0x210] sm:$0xff]  ;;  %v107_v8 = vld [vmem:[#allocation2 + $0x218] sm:$0xff] }
  0x5a   :  { %v394_v7 = vld [vmem:[#allocation5 + $0x210] sm:$0xff]  ;;  %v395_v10 = vld [vmem:[#allocation5 + $0x218] sm:$0xff]  ;;  %v108_v11 = vld [vmem:[#allocation2 + $0x220] sm:$0xff] }
  0x5b   :  { %967 = vst [vmem:[#allocation7 + $0x1f8] sm:$0xff] %v679_v0  ;;  %v682_v9 = vadd.f32 %v394_v7, %v106_v6  ;;  %v396_v12 = vld [vmem:[#allocation5 + $0x220] sm:$0xff]  ;;  %968 = vst [vmem:[#allocation7 + $0x200] sm:$0xff] %v680_v4  ;;  %v683_v13 = vadd.f32 %v395_v10, %v107_v8  ;;  %v109_v15 = vld [vmem:[#allocation2 + $0x228] sm:$0xff] }
  0x5c   :  { %969 = vst [vmem:[#allocation7 + $0x208] sm:$0xff] %v681_v5  ;;  %v684_v14 = vadd.f32 %v396_v12, %v108_v11  ;;  %v397_v16 = vld [vmem:[#allocation5 + $0x228] sm:$0xff]  ;;  %v110_v17 = vld [vmem:[#allocation2 + $0x230] sm:$0xff]  ;;  %v111_v20 = vld [vmem:[#allocation2 + $0x238] sm:$0xff] }
  0x5d   :  { %970 = vst [vmem:[#allocation7 + $0x210] sm:$0xff] %v682_v9  ;;  %v685_v18 = vadd.f32 %v397_v16, %v109_v15  ;;  %v398_v19 = vld [vmem:[#allocation5 + $0x230] sm:$0xff]  ;;  %v399_v21 = vld [vmem:[#allocation5 + $0x238] sm:$0xff]  ;;  %971 = vst [vmem:[#allocation7 + $0x218] sm:$0xff] %v683_v13 }
  0x5e   :  { %972 = vst [vmem:[#allocation7 + $0x220] sm:$0xff] %v684_v14  ;;  %v686_v22 = vadd.f32 %v398_v19, %v110_v17  ;;  %v687_v23 = vadd.f32 %v399_v21, %v111_v20  ;;  %v112_v24 = vld [vmem:[#allocation2 + $0x240] sm:$0xff]  ;;  %v113_v26 = vld [vmem:[#allocation2 + $0x248] sm:$0xff]  ;;  %v114_v29 = vld [vmem:[#allocation2 + $0x250] sm:$0xff] }
  0x5f   :  { %v400_v25 = vld [vmem:[#allocation5 + $0x240] sm:$0xff]  ;;  %973 = vst [vmem:[#allocation7 + $0x228] sm:$0xff] %v685_v18  ;;  %v401_v28 = vld [vmem:[#allocation5 + $0x248] sm:$0xff]  ;;  %v402_v30 = vld [vmem:[#allocation5 + $0x250] sm:$0xff] }
  0x60   :  { %v688_v27 = vadd.f32 %v400_v25, %v112_v24  ;;  %974 = vst [vmem:[#allocation7 + $0x230] sm:$0xff] %v686_v22  ;;  %975 = vst [vmem:[#allocation7 + $0x238] sm:$0xff] %v687_v23  ;;  %v689_v31 = vadd.f32 %v401_v28, %v113_v26  ;;  %v690_v32 = vadd.f32 %v402_v30, %v114_v29  ;;  %v115_v33 = vld [vmem:[#allocation2 + $0x258] sm:$0xff]  ;;  %v116_v35 = vld [vmem:[#allocation2 + $0x260] sm:$0xff] }
  0x61   :  { %v403_v34 = vld [vmem:[#allocation5 + $0x258] sm:$0xff]  ;;  %v404_v37 = vld [vmem:[#allocation5 + $0x260] sm:$0xff]  ;;  %v117_v38 = vld [vmem:[#allocation2 + $0x268] sm:$0xff] }
  0x62   :  { %976 = vst [vmem:[#allocation7 + $0x240] sm:$0xff] %v688_v27  ;;  %v691_v36 = vadd.f32 %v403_v34, %v115_v33  ;;  %v405_v39 = vld [vmem:[#allocation5 + $0x268] sm:$0xff]  ;;  %977 = vst [vmem:[#allocation7 + $0x248] sm:$0xff] %v689_v31  ;;  %v692_v40 = vadd.f32 %v404_v37, %v116_v35  ;;  %v118_v42 = vld [vmem:[#allocation2 + $0x270] sm:$0xff] }
  0x63   :  { %978 = vst [vmem:[#allocation7 + $0x250] sm:$0xff] %v690_v32  ;;  %v693_v41 = vadd.f32 %v405_v39, %v117_v38  ;;  %v406_v43 = vld [vmem:[#allocation5 + $0x270] sm:$0xff]  ;;  %v119_v44 = vld [vmem:[#allocation2 + $0x278] sm:$0xff]  ;;  %v120_v47 = vld [vmem:[#allocation2 + $0x280] sm:$0xff] }
  0x64   :  { %979 = vst [vmem:[#allocation7 + $0x258] sm:$0xff] %v691_v36  ;;  %v694_v45 = vadd.f32 %v406_v43, %v118_v42  ;;  %v407_v46 = vld [vmem:[#allocation5 + $0x278] sm:$0xff]  ;;  %v408_v48 = vld [vmem:[#allocation5 + $0x280] sm:$0xff]  ;;  %980 = vst [vmem:[#allocation7 + $0x260] sm:$0xff] %v692_v40 }
  0x65   :  { %981 = vst [vmem:[#allocation7 + $0x268] sm:$0xff] %v693_v41  ;;  %v695_v49 = vadd.f32 %v407_v46, %v119_v44  ;;  %v696_v50 = vadd.f32 %v408_v48, %v120_v47  ;;  %v121_v51 = vld [vmem:[#allocation2 + $0x288] sm:$0xff]  ;;  %v122_v53 = vld [vmem:[#allocation2 + $0x290] sm:$0xff]  ;;  %v123_v56 = vld [vmem:[#allocation2 + $0x298] sm:$0xff] }
  0x66   :  { %v409_v52 = vld [vmem:[#allocation5 + $0x288] sm:$0xff]  ;;  %982 = vst [vmem:[#allocation7 + $0x270] sm:$0xff] %v694_v45  ;;  %v410_v55 = vld [vmem:[#allocation5 + $0x290] sm:$0xff]  ;;  %v411_v57 = vld [vmem:[#allocation5 + $0x298] sm:$0xff] }
  0x67   :  { %v697_v54 = vadd.f32 %v409_v52, %v121_v51  ;;  %983 = vst [vmem:[#allocation7 + $0x278] sm:$0xff] %v695_v49  ;;  %984 = vst [vmem:[#allocation7 + $0x280] sm:$0xff] %v696_v50  ;;  %v698_v58 = vadd.f32 %v410_v55, %v122_v53  ;;  %v699_v59 = vadd.f32 %v411_v57, %v123_v56  ;;  %v124_v60 = vld [vmem:[#allocation2 + $0x2a0] sm:$0xff]  ;;  %v125_v62 = vld [vmem:[#allocation2 + $0x2a8] sm:$0xff] }
  0x68   :  { %v412_v61 = vld [vmem:[#allocation5 + $0x2a0] sm:$0xff]  ;;  %v413_v0 = vld [vmem:[#allocation5 + $0x2a8] sm:$0xff]  ;;  %v126_v1 = vld [vmem:[#allocation2 + $0x2b0] sm:$0xff] }
  0x69   :  { %985 = vst [vmem:[#allocation7 + $0x288] sm:$0xff] %v697_v54  ;;  %v700_v63 = vadd.f32 %v412_v61, %v124_v60  ;;  %v414_v2 = vld [vmem:[#allocation5 + $0x2b0] sm:$0xff]  ;;  %986 = vst [vmem:[#allocation7 + $0x290] sm:$0xff] %v698_v58  ;;  %v701_v3 = vadd.f32 %v413_v0, %v125_v62  ;;  %v127_v5 = vld [vmem:[#allocation2 + $0x2b8] sm:$0xff] }
  0x6a   :  { %987 = vst [vmem:[#allocation7 + $0x298] sm:$0xff] %v699_v59  ;;  %v702_v4 = vadd.f32 %v414_v2, %v126_v1  ;;  %v415_v6 = vld [vmem:[#allocation5 + $0x2b8] sm:$0xff]  ;;  %v128_v7 = vld [vmem:[#allocation2 + $0x2c0] sm:$0xff]  ;;  %v129_v10 = vld [vmem:[#allocation2 + $0x2c8] sm:$0xff] }
  0x6b   :  { %988 = vst [vmem:[#allocation7 + $0x2a0] sm:$0xff] %v700_v63  ;;  %v703_v8 = vadd.f32 %v415_v6, %v127_v5  ;;  %v416_v9 = vld [vmem:[#allocation5 + $0x2c0] sm:$0xff]  ;;  %v417_v11 = vld [vmem:[#allocation5 + $0x2c8] sm:$0xff]  ;;  %989 = vst [vmem:[#allocation7 + $0x2a8] sm:$0xff] %v701_v3 }
  0x6c   :  { %990 = vst [vmem:[#allocation7 + $0x2b0] sm:$0xff] %v702_v4  ;;  %v704_v12 = vadd.f32 %v416_v9, %v128_v7  ;;  %v705_v13 = vadd.f32 %v417_v11, %v129_v10  ;;  %v130_v14 = vld [vmem:[#allocation2 + $0x2d0] sm:$0xff]  ;;  %v131_v16 = vld [vmem:[#allocation2 + $0x2d8] sm:$0xff]  ;;  %v132_v19 = vld [vmem:[#allocation2 + $0x2e0] sm:$0xff] }
  0x6d   :  { %v418_v15 = vld [vmem:[#allocation5 + $0x2d0] sm:$0xff]  ;;  %991 = vst [vmem:[#allocation7 + $0x2b8] sm:$0xff] %v703_v8  ;;  %v419_v18 = vld [vmem:[#allocation5 + $0x2d8] sm:$0xff]  ;;  %v420_v20 = vld [vmem:[#allocation5 + $0x2e0] sm:$0xff] }
  0x6e   :  { %v706_v17 = vadd.f32 %v418_v15, %v130_v14  ;;  %992 = vst [vmem:[#allocation7 + $0x2c0] sm:$0xff] %v704_v12  ;;  %993 = vst [vmem:[#allocation7 + $0x2c8] sm:$0xff] %v705_v13  ;;  %v707_v21 = vadd.f32 %v419_v18, %v131_v16  ;;  %v708_v22 = vadd.f32 %v420_v20, %v132_v19  ;;  %v133_v23 = vld [vmem:[#allocation2 + $0x2e8] sm:$0xff]  ;;  %v134_v25 = vld [vmem:[#allocation2 + $0x2f0] sm:$0xff] }
  0x6f   :  { %v421_v24 = vld [vmem:[#allocation5 + $0x2e8] sm:$0xff]  ;;  %v422_v27 = vld [vmem:[#allocation5 + $0x2f0] sm:$0xff]  ;;  %v135_v28 = vld [vmem:[#allocation2 + $0x2f8] sm:$0xff] }
  0x70   :  { %994 = vst [vmem:[#allocation7 + $0x2d0] sm:$0xff] %v706_v17  ;;  %v709_v26 = vadd.f32 %v421_v24, %v133_v23  ;;  %v423_v29 = vld [vmem:[#allocation5 + $0x2f8] sm:$0xff]  ;;  %995 = vst [vmem:[#allocation7 + $0x2d8] sm:$0xff] %v707_v21  ;;  %v710_v30 = vadd.f32 %v422_v27, %v134_v25  ;;  %v136_v32 = vld [vmem:[#allocation2 + $0x300] sm:$0xff] }
  0x71   :  { %996 = vst [vmem:[#allocation7 + $0x2e0] sm:$0xff] %v708_v22  ;;  %v711_v31 = vadd.f32 %v423_v29, %v135_v28  ;;  %v424_v33 = vld [vmem:[#allocation5 + $0x300] sm:$0xff]  ;;  %v137_v34 = vld [vmem:[#allocation2 + $0x308] sm:$0xff]  ;;  %v138_v37 = vld [vmem:[#allocation2 + $0x310] sm:$0xff] }
  0x72   :  { %997 = vst [vmem:[#allocation7 + $0x2e8] sm:$0xff] %v709_v26  ;;  %v712_v35 = vadd.f32 %v424_v33, %v136_v32  ;;  %v425_v36 = vld [vmem:[#allocation5 + $0x308] sm:$0xff]  ;;  %v426_v38 = vld [vmem:[#allocation5 + $0x310] sm:$0xff]  ;;  %998 = vst [vmem:[#allocation7 + $0x2f0] sm:$0xff] %v710_v30 }
  0x73   :  { %999 = vst [vmem:[#allocation7 + $0x2f8] sm:$0xff] %v711_v31  ;;  %v713_v39 = vadd.f32 %v425_v36, %v137_v34  ;;  %v714_v40 = vadd.f32 %v426_v38, %v138_v37  ;;  %v139_v41 = vld [vmem:[#allocation2 + $0x318] sm:$0xff]  ;;  %v140_v43 = vld [vmem:[#allocation2 + $0x320] sm:$0xff]  ;;  %v141_v46 = vld [vmem:[#allocation2 + $0x328] sm:$0xff] }
  0x74   :  { %v427_v42 = vld [vmem:[#allocation5 + $0x318] sm:$0xff]  ;;  %1000 = vst [vmem:[#allocation7 + $0x300] sm:$0xff] %v712_v35  ;;  %v428_v45 = vld [vmem:[#allocation5 + $0x320] sm:$0xff]  ;;  %v429_v47 = vld [vmem:[#allocation5 + $0x328] sm:$0xff] }
  0x75   :  { %v715_v44 = vadd.f32 %v427_v42, %v139_v41  ;;  %1001 = vst [vmem:[#allocation7 + $0x308] sm:$0xff] %v713_v39  ;;  %1002 = vst [vmem:[#allocation7 + $0x310] sm:$0xff] %v714_v40  ;;  %v716_v48 = vadd.f32 %v428_v45, %v140_v43  ;;  %v717_v49 = vadd.f32 %v429_v47, %v141_v46  ;;  %v142_v50 = vld [vmem:[#allocation2 + $0x330] sm:$0xff]  ;;  %v143_v52 = vld [vmem:[#allocation2 + $0x338] sm:$0xff] }
  0x76   :  { %v430_v51 = vld [vmem:[#allocation5 + $0x330] sm:$0xff]  ;;  %v431_v54 = vld [vmem:[#allocation5 + $0x338] sm:$0xff]  ;;  %v144_v55 = vld [vmem:[#allocation2 + $0x340] sm:$0xff] }
  0x77   :  { %1003 = vst [vmem:[#allocation7 + $0x318] sm:$0xff] %v715_v44  ;;  %v718_v53 = vadd.f32 %v430_v51, %v142_v50  ;;  %v432_v56 = vld [vmem:[#allocation5 + $0x340] sm:$0xff]  ;;  %1004 = vst [vmem:[#allocation7 + $0x320] sm:$0xff] %v716_v48  ;;  %v719_v57 = vadd.f32 %v431_v54, %v143_v52  ;;  %v145_v59 = vld [vmem:[#allocation2 + $0x348] sm:$0xff] }
  0x78   :  { %1005 = vst [vmem:[#allocation7 + $0x328] sm:$0xff] %v717_v49  ;;  %v720_v58 = vadd.f32 %v432_v56, %v144_v55  ;;  %v433_v60 = vld [vmem:[#allocation5 + $0x348] sm:$0xff]  ;;  %v146_v61 = vld [vmem:[#allocation2 + $0x350] sm:$0xff]  ;;  %v147_v0 = vld [vmem:[#allocation2 + $0x358] sm:$0xff] }
  0x79   :  { %1006 = vst [vmem:[#allocation7 + $0x330] sm:$0xff] %v718_v53  ;;  %v721_v62 = vadd.f32 %v433_v60, %v145_v59  ;;  %v434_v63 = vld [vmem:[#allocation5 + $0x350] sm:$0xff]  ;;  %v435_v1 = vld [vmem:[#allocation5 + $0x358] sm:$0xff]  ;;  %1007 = vst [vmem:[#allocation7 + $0x338] sm:$0xff] %v719_v57 }
  0x7a   :  { %1008 = vst [vmem:[#allocation7 + $0x340] sm:$0xff] %v720_v58  ;;  %v722_v2 = vadd.f32 %v434_v63, %v146_v61  ;;  %v723_v3 = vadd.f32 %v435_v1, %v147_v0  ;;  %v148_v4 = vld [vmem:[#allocation2 + $0x360] sm:$0xff]  ;;  %v149_v6 = vld [vmem:[#allocation2 + $0x368] sm:$0xff]  ;;  %v150_v9 = vld [vmem:[#allocation2 + $0x370] sm:$0xff] }
  0x7b   :  { %v436_v5 = vld [vmem:[#allocation5 + $0x360] sm:$0xff]  ;;  %1009 = vst [vmem:[#allocation7 + $0x348] sm:$0xff] %v721_v62  ;;  %v437_v8 = vld [vmem:[#allocation5 + $0x368] sm:$0xff]  ;;  %v438_v10 = vld [vmem:[#allocation5 + $0x370] sm:$0xff] }
  0x7c   :  { %v724_v7 = vadd.f32 %v436_v5, %v148_v4  ;;  %1010 = vst [vmem:[#allocation7 + $0x350] sm:$0xff] %v722_v2  ;;  %1011 = vst [vmem:[#allocation7 + $0x358] sm:$0xff] %v723_v3  ;;  %v725_v11 = vadd.f32 %v437_v8, %v149_v6  ;;  %v726_v12 = vadd.f32 %v438_v10, %v150_v9  ;;  %v151_v13 = vld [vmem:[#allocation2 + $0x378] sm:$0xff]  ;;  %v152_v15 = vld [vmem:[#allocation2 + $0x380] sm:$0xff] }
  0x7d   :  { %v439_v14 = vld [vmem:[#allocation5 + $0x378] sm:$0xff]  ;;  %v440_v17 = vld [vmem:[#allocation5 + $0x380] sm:$0xff]  ;;  %v153_v18 = vld [vmem:[#allocation2 + $0x388] sm:$0xff] }
  0x7e   :  { %1012 = vst [vmem:[#allocation7 + $0x360] sm:$0xff] %v724_v7  ;;  %v727_v16 = vadd.f32 %v439_v14, %v151_v13  ;;  %v441_v19 = vld [vmem:[#allocation5 + $0x388] sm:$0xff]  ;;  %1013 = vst [vmem:[#allocation7 + $0x368] sm:$0xff] %v725_v11  ;;  %v728_v20 = vadd.f32 %v440_v17, %v152_v15  ;;  %v154_v22 = vld [vmem:[#allocation2 + $0x390] sm:$0xff] }
  0x7f   :  { %1014 = vst [vmem:[#allocation7 + $0x370] sm:$0xff] %v726_v12  ;;  %v729_v21 = vadd.f32 %v441_v19, %v153_v18  ;;  %v442_v23 = vld [vmem:[#allocation5 + $0x390] sm:$0xff]  ;;  %v155_v24 = vld [vmem:[#allocation2 + $0x398] sm:$0xff]  ;;  %v156_v27 = vld [vmem:[#allocation2 + $0x3a0] sm:$0xff] }
  0x80   :  { %1015 = vst [vmem:[#allocation7 + $0x378] sm:$0xff] %v727_v16  ;;  %v730_v25 = vadd.f32 %v442_v23, %v154_v22  ;;  %v443_v26 = vld [vmem:[#allocation5 + $0x398] sm:$0xff]  ;;  %v444_v28 = vld [vmem:[#allocation5 + $0x3a0] sm:$0xff]  ;;  %1016 = vst [vmem:[#allocation7 + $0x380] sm:$0xff] %v728_v20 }
  0x81   :  { %1017 = vst [vmem:[#allocation7 + $0x388] sm:$0xff] %v729_v21  ;;  %v731_v29 = vadd.f32 %v443_v26, %v155_v24  ;;  %v732_v30 = vadd.f32 %v444_v28, %v156_v27  ;;  %v157_v31 = vld [vmem:[#allocation2 + $0x3a8] sm:$0xff]  ;;  %v158_v33 = vld [vmem:[#allocation2 + $0x3b0] sm:$0xff]  ;;  %v159_v36 = vld [vmem:[#allocation2 + $0x3b8] sm:$0xff] }
  0x82   :  { %v445_v32 = vld [vmem:[#allocation5 + $0x3a8] sm:$0xff]  ;;  %1018 = vst [vmem:[#allocation7 + $0x390] sm:$0xff] %v730_v25  ;;  %v446_v35 = vld [vmem:[#allocation5 + $0x3b0] sm:$0xff]  ;;  %v447_v37 = vld [vmem:[#allocation5 + $0x3b8] sm:$0xff] }
  0x83   :  { %v733_v34 = vadd.f32 %v445_v32, %v157_v31  ;;  %1019 = vst [vmem:[#allocation7 + $0x398] sm:$0xff] %v731_v29  ;;  %1020 = vst [vmem:[#allocation7 + $0x3a0] sm:$0xff] %v732_v30  ;;  %v734_v38 = vadd.f32 %v446_v35, %v158_v33  ;;  %v735_v39 = vadd.f32 %v447_v37, %v159_v36  ;;  %v160_v40 = vld [vmem:[#allocation2 + $0x3c0] sm:$0xff]  ;;  %v161_v42 = vld [vmem:[#allocation2 + $0x3c8] sm:$0xff] }
  0x84   :  { %v448_v41 = vld [vmem:[#allocation5 + $0x3c0] sm:$0xff]  ;;  %v449_v44 = vld [vmem:[#allocation5 + $0x3c8] sm:$0xff]  ;;  %v162_v45 = vld [vmem:[#allocation2 + $0x3d0] sm:$0xff] }
  0x85   :  { %1021 = vst [vmem:[#allocation7 + $0x3a8] sm:$0xff] %v733_v34  ;;  %v736_v43 = vadd.f32 %v448_v41, %v160_v40  ;;  %v450_v46 = vld [vmem:[#allocation5 + $0x3d0] sm:$0xff]  ;;  %1022 = vst [vmem:[#allocation7 + $0x3b0] sm:$0xff] %v734_v38  ;;  %v737_v47 = vadd.f32 %v449_v44, %v161_v42  ;;  %v163_v49 = vld [vmem:[#allocation2 + $0x3d8] sm:$0xff] }
  0x86   :  { %1023 = vst [vmem:[#allocation7 + $0x3b8] sm:$0xff] %v735_v39  ;;  %v738_v48 = vadd.f32 %v450_v46, %v162_v45  ;;  %v451_v50 = vld [vmem:[#allocation5 + $0x3d8] sm:$0xff]  ;;  %v164_v51 = vld [vmem:[#allocation2 + $0x3e0] sm:$0xff]  ;;  %v165_v54 = vld [vmem:[#allocation2 + $0x3e8] sm:$0xff] }
  0x87   :  { %1024 = vst [vmem:[#allocation7 + $0x3c0] sm:$0xff] %v736_v43  ;;  %v739_v52 = vadd.f32 %v451_v50, %v163_v49  ;;  %v452_v53 = vld [vmem:[#allocation5 + $0x3e0] sm:$0xff]  ;;  %v453_v55 = vld [vmem:[#allocation5 + $0x3e8] sm:$0xff]  ;;  %1025 = vst [vmem:[#allocation7 + $0x3c8] sm:$0xff] %v737_v47 }
  0x88   :  { %1026 = vst [vmem:[#allocation7 + $0x3d0] sm:$0xff] %v738_v48  ;;  %v740_v56 = vadd.f32 %v452_v53, %v164_v51  ;;  %v741_v57 = vadd.f32 %v453_v55, %v165_v54  ;;  %v166_v58 = vld [vmem:[#allocation2 + $0x3f0] sm:$0xff]  ;;  %v167_v60 = vld [vmem:[#allocation2 + $0x3f8] sm:$0xff]  ;;  %v168_v63 = vld [vmem:[#allocation2 + $0x400] sm:$0xff] }
  0x89   :  { %v454_v59 = vld [vmem:[#allocation5 + $0x3f0] sm:$0xff]  ;;  %1027 = vst [vmem:[#allocation7 + $0x3d8] sm:$0xff] %v739_v52  ;;  %v455_v62 = vld [vmem:[#allocation5 + $0x3f8] sm:$0xff]  ;;  %v456_v0 = vld [vmem:[#allocation5 + $0x400] sm:$0xff] }
  0x8a   :  { %v742_v61 = vadd.f32 %v454_v59, %v166_v58  ;;  %1028 = vst [vmem:[#allocation7 + $0x3e0] sm:$0xff] %v740_v56  ;;  %1029 = vst [vmem:[#allocation7 + $0x3e8] sm:$0xff] %v741_v57  ;;  %v743_v1 = vadd.f32 %v455_v62, %v167_v60  ;;  %v744_v2 = vadd.f32 %v456_v0, %v168_v63  ;;  %v169_v3 = vld [vmem:[#allocation2 + $0x408] sm:$0xff]  ;;  %v170_v5 = vld [vmem:[#allocation2 + $0x410] sm:$0xff] }
  0x8b   :  { %v457_v4 = vld [vmem:[#allocation5 + $0x408] sm:$0xff]  ;;  %v458_v7 = vld [vmem:[#allocation5 + $0x410] sm:$0xff]  ;;  %v171_v8 = vld [vmem:[#allocation2 + $0x418] sm:$0xff] }
  0x8c   :  { %1030 = vst [vmem:[#allocation7 + $0x3f0] sm:$0xff] %v742_v61  ;;  %v745_v6 = vadd.f32 %v457_v4, %v169_v3  ;;  %v459_v9 = vld [vmem:[#allocation5 + $0x418] sm:$0xff]  ;;  %1031 = vst [vmem:[#allocation7 + $0x3f8] sm:$0xff] %v743_v1  ;;  %v746_v10 = vadd.f32 %v458_v7, %v170_v5  ;;  %v172_v12 = vld [vmem:[#allocation2 + $0x420] sm:$0xff] }
  0x8d   :  { %1032 = vst [vmem:[#allocation7 + $0x400] sm:$0xff] %v744_v2  ;;  %v747_v11 = vadd.f32 %v459_v9, %v171_v8  ;;  %v460_v13 = vld [vmem:[#allocation5 + $0x420] sm:$0xff]  ;;  %v173_v14 = vld [vmem:[#allocation2 + $0x428] sm:$0xff]  ;;  %v174_v17 = vld [vmem:[#allocation2 + $0x430] sm:$0xff] }
  0x8e   :  { %1033 = vst [vmem:[#allocation7 + $0x408] sm:$0xff] %v745_v6  ;;  %v748_v15 = vadd.f32 %v460_v13, %v172_v12  ;;  %v461_v16 = vld [vmem:[#allocation5 + $0x428] sm:$0xff]  ;;  %v462_v18 = vld [vmem:[#allocation5 + $0x430] sm:$0xff]  ;;  %1034 = vst [vmem:[#allocation7 + $0x410] sm:$0xff] %v746_v10 }
  0x8f   :  { %1035 = vst [vmem:[#allocation7 + $0x418] sm:$0xff] %v747_v11  ;;  %v749_v19 = vadd.f32 %v461_v16, %v173_v14  ;;  %v750_v20 = vadd.f32 %v462_v18, %v174_v17  ;;  %v175_v21 = vld [vmem:[#allocation2 + $0x438] sm:$0xff]  ;;  %v176_v23 = vld [vmem:[#allocation2 + $0x440] sm:$0xff]  ;;  %v177_v26 = vld [vmem:[#allocation2 + $0x448] sm:$0xff] }
  0x90   :  { %v463_v22 = vld [vmem:[#allocation5 + $0x438] sm:$0xff]  ;;  %1036 = vst [vmem:[#allocation7 + $0x420] sm:$0xff] %v748_v15  ;;  %v464_v25 = vld [vmem:[#allocation5 + $0x440] sm:$0xff]  ;;  %v465_v27 = vld [vmem:[#allocation5 + $0x448] sm:$0xff] }
  0x91   :  { %v751_v24 = vadd.f32 %v463_v22, %v175_v21  ;;  %1037 = vst [vmem:[#allocation7 + $0x428] sm:$0xff] %v749_v19  ;;  %1038 = vst [vmem:[#allocation7 + $0x430] sm:$0xff] %v750_v20  ;;  %v752_v28 = vadd.f32 %v464_v25, %v176_v23  ;;  %v753_v29 = vadd.f32 %v465_v27, %v177_v26  ;;  %v178_v30 = vld [vmem:[#allocation2 + $0x450] sm:$0xff]  ;;  %v179_v32 = vld [vmem:[#allocation2 + $0x458] sm:$0xff] }
  0x92   :  { %v466_v31 = vld [vmem:[#allocation5 + $0x450] sm:$0xff]  ;;  %v467_v34 = vld [vmem:[#allocation5 + $0x458] sm:$0xff]  ;;  %v180_v35 = vld [vmem:[#allocation2 + $0x460] sm:$0xff] }
  0x93   :  { %1039 = vst [vmem:[#allocation7 + $0x438] sm:$0xff] %v751_v24  ;;  %v754_v33 = vadd.f32 %v466_v31, %v178_v30  ;;  %v468_v36 = vld [vmem:[#allocation5 + $0x460] sm:$0xff]  ;;  %1040 = vst [vmem:[#allocation7 + $0x440] sm:$0xff] %v752_v28  ;;  %v755_v37 = vadd.f32 %v467_v34, %v179_v32  ;;  %v181_v39 = vld [vmem:[#allocation2 + $0x468] sm:$0xff] }
  0x94   :  { %1041 = vst [vmem:[#allocation7 + $0x448] sm:$0xff] %v753_v29  ;;  %v756_v38 = vadd.f32 %v468_v36, %v180_v35  ;;  %v469_v40 = vld [vmem:[#allocation5 + $0x468] sm:$0xff]  ;;  %v182_v41 = vld [vmem:[#allocation2 + $0x470] sm:$0xff]  ;;  %v183_v44 = vld [vmem:[#allocation2 + $0x478] sm:$0xff] }
  0x95   :  { %1042 = vst [vmem:[#allocation7 + $0x450] sm:$0xff] %v754_v33  ;;  %v757_v42 = vadd.f32 %v469_v40, %v181_v39  ;;  %v470_v43 = vld [vmem:[#allocation5 + $0x470] sm:$0xff]  ;;  %v471_v45 = vld [vmem:[#allocation5 + $0x478] sm:$0xff]  ;;  %1043 = vst [vmem:[#allocation7 + $0x458] sm:$0xff] %v755_v37 }
  0x96   :  { %1044 = vst [vmem:[#allocation7 + $0x460] sm:$0xff] %v756_v38  ;;  %v758_v46 = vadd.f32 %v470_v43, %v182_v41  ;;  %v759_v47 = vadd.f32 %v471_v45, %v183_v44  ;;  %v184_v48 = vld [vmem:[#allocation2 + $0x480] sm:$0xff]  ;;  %v185_v50 = vld [vmem:[#allocation2 + $0x488] sm:$0xff]  ;;  %v186_v53 = vld [vmem:[#allocation2 + $0x490] sm:$0xff] }
  0x97   :  { %v472_v49 = vld [vmem:[#allocation5 + $0x480] sm:$0xff]  ;;  %1045 = vst [vmem:[#allocation7 + $0x468] sm:$0xff] %v757_v42  ;;  %v473_v52 = vld [vmem:[#allocation5 + $0x488] sm:$0xff]  ;;  %v474_v54 = vld [vmem:[#allocation5 + $0x490] sm:$0xff] }
  0x98   :  { %v760_v51 = vadd.f32 %v472_v49, %v184_v48  ;;  %1046 = vst [vmem:[#allocation7 + $0x470] sm:$0xff] %v758_v46  ;;  %1047 = vst [vmem:[#allocation7 + $0x478] sm:$0xff] %v759_v47  ;;  %v761_v55 = vadd.f32 %v473_v52, %v185_v50  ;;  %v762_v56 = vadd.f32 %v474_v54, %v186_v53  ;;  %v187_v57 = vld [vmem:[#allocation2 + $0x498] sm:$0xff]  ;;  %v188_v59 = vld [vmem:[#allocation2 + $0x4a0] sm:$0xff] }
  0x99   :  { %v475_v58 = vld [vmem:[#allocation5 + $0x498] sm:$0xff]  ;;  %v476_v61 = vld [vmem:[#allocation5 + $0x4a0] sm:$0xff]  ;;  %v189_v62 = vld [vmem:[#allocation2 + $0x4a8] sm:$0xff] }
  0x9a   :  { %1048 = vst [vmem:[#allocation7 + $0x480] sm:$0xff] %v760_v51  ;;  %v763_v60 = vadd.f32 %v475_v58, %v187_v57  ;;  %v477_v63 = vld [vmem:[#allocation5 + $0x4a8] sm:$0xff]  ;;  %1049 = vst [vmem:[#allocation7 + $0x488] sm:$0xff] %v761_v55  ;;  %v764_v0 = vadd.f32 %v476_v61, %v188_v59  ;;  %v190_v2 = vld [vmem:[#allocation2 + $0x4b0] sm:$0xff] }
  0x9b   :  { %1050 = vst [vmem:[#allocation7 + $0x490] sm:$0xff] %v762_v56  ;;  %v765_v1 = vadd.f32 %v477_v63, %v189_v62  ;;  %v478_v3 = vld [vmem:[#allocation5 + $0x4b0] sm:$0xff]  ;;  %v191_v4 = vld [vmem:[#allocation2 + $0x4b8] sm:$0xff]  ;;  %v192_v7 = vld [vmem:[#allocation2 + $0x4c0] sm:$0xff] }
  0x9c   :  { %1051 = vst [vmem:[#allocation7 + $0x498] sm:$0xff] %v763_v60  ;;  %v766_v5 = vadd.f32 %v478_v3, %v190_v2  ;;  %v479_v6 = vld [vmem:[#allocation5 + $0x4b8] sm:$0xff]  ;;  %v480_v8 = vld [vmem:[#allocation5 + $0x4c0] sm:$0xff]  ;;  %1052 = vst [vmem:[#allocation7 + $0x4a0] sm:$0xff] %v764_v0 }
  0x9d   :  { %1053 = vst [vmem:[#allocation7 + $0x4a8] sm:$0xff] %v765_v1  ;;  %v767_v9 = vadd.f32 %v479_v6, %v191_v4  ;;  %v768_v10 = vadd.f32 %v480_v8, %v192_v7  ;;  %v193_v11 = vld [vmem:[#allocation2 + $0x4c8] sm:$0xff]  ;;  %v194_v13 = vld [vmem:[#allocation2 + $0x4d0] sm:$0xff]  ;;  %v195_v16 = vld [vmem:[#allocation2 + $0x4d8] sm:$0xff] }
  0x9e   :  { %v481_v12 = vld [vmem:[#allocation5 + $0x4c8] sm:$0xff]  ;;  %1054 = vst [vmem:[#allocation7 + $0x4b0] sm:$0xff] %v766_v5  ;;  %v482_v15 = vld [vmem:[#allocation5 + $0x4d0] sm:$0xff]  ;;  %v483_v17 = vld [vmem:[#allocation5 + $0x4d8] sm:$0xff] }
  0x9f   :  { %v769_v14 = vadd.f32 %v481_v12, %v193_v11  ;;  %1055 = vst [vmem:[#allocation7 + $0x4b8] sm:$0xff] %v767_v9  ;;  %1056 = vst [vmem:[#allocation7 + $0x4c0] sm:$0xff] %v768_v10  ;;  %v770_v18 = vadd.f32 %v482_v15, %v194_v13  ;;  %v771_v19 = vadd.f32 %v483_v17, %v195_v16  ;;  %v196_v20 = vld [vmem:[#allocation2 + $0x4e0] sm:$0xff]  ;;  %v197_v22 = vld [vmem:[#allocation2 + $0x4e8] sm:$0xff] }
  0xa0   :  { %v484_v21 = vld [vmem:[#allocation5 + $0x4e0] sm:$0xff]  ;;  %v485_v24 = vld [vmem:[#allocation5 + $0x4e8] sm:$0xff]  ;;  %v198_v25 = vld [vmem:[#allocation2 + $0x4f0] sm:$0xff] }
  0xa1   :  { %1057 = vst [vmem:[#allocation7 + $0x4c8] sm:$0xff] %v769_v14  ;;  %v772_v23 = vadd.f32 %v484_v21, %v196_v20  ;;  %v486_v26 = vld [vmem:[#allocation5 + $0x4f0] sm:$0xff]  ;;  %1058 = vst [vmem:[#allocation7 + $0x4d0] sm:$0xff] %v770_v18  ;;  %v773_v27 = vadd.f32 %v485_v24, %v197_v22  ;;  %v199_v29 = vld [vmem:[#allocation2 + $0x4f8] sm:$0xff] }
  0xa2   :  { %1059 = vst [vmem:[#allocation7 + $0x4d8] sm:$0xff] %v771_v19  ;;  %v774_v28 = vadd.f32 %v486_v26, %v198_v25  ;;  %v487_v30 = vld [vmem:[#allocation5 + $0x4f8] sm:$0xff]  ;;  %v200_v31 = vld [vmem:[#allocation2 + $0x500] sm:$0xff]  ;;  %v201_v34 = vld [vmem:[#allocation2 + $0x508] sm:$0xff] }
  0xa3   :  { %1060 = vst [vmem:[#allocation7 + $0x4e0] sm:$0xff] %v772_v23  ;;  %v775_v32 = vadd.f32 %v487_v30, %v199_v29  ;;  %v488_v33 = vld [vmem:[#allocation5 + $0x500] sm:$0xff]  ;;  %v489_v35 = vld [vmem:[#allocation5 + $0x508] sm:$0xff]  ;;  %1061 = vst [vmem:[#allocation7 + $0x4e8] sm:$0xff] %v773_v27 }
  0xa4   :  { %1062 = vst [vmem:[#allocation7 + $0x4f0] sm:$0xff] %v774_v28  ;;  %v776_v36 = vadd.f32 %v488_v33, %v200_v31  ;;  %v777_v37 = vadd.f32 %v489_v35, %v201_v34  ;;  %v202_v38 = vld [vmem:[#allocation2 + $0x510] sm:$0xff]  ;;  %v203_v40 = vld [vmem:[#allocation2 + $0x518] sm:$0xff]  ;;  %v204_v43 = vld [vmem:[#allocation2 + $0x520] sm:$0xff] }
  0xa5   :  { %v490_v39 = vld [vmem:[#allocation5 + $0x510] sm:$0xff]  ;;  %1063 = vst [vmem:[#allocation7 + $0x4f8] sm:$0xff] %v775_v32  ;;  %v491_v42 = vld [vmem:[#allocation5 + $0x518] sm:$0xff]  ;;  %v492_v44 = vld [vmem:[#allocation5 + $0x520] sm:$0xff] }
  0xa6   :  { %v778_v41 = vadd.f32 %v490_v39, %v202_v38  ;;  %1064 = vst [vmem:[#allocation7 + $0x500] sm:$0xff] %v776_v36  ;;  %1065 = vst [vmem:[#allocation7 + $0x508] sm:$0xff] %v777_v37  ;;  %v779_v45 = vadd.f32 %v491_v42, %v203_v40  ;;  %v780_v46 = vadd.f32 %v492_v44, %v204_v43  ;;  %v205_v47 = vld [vmem:[#allocation2 + $0x528] sm:$0xff]  ;;  %v206_v49 = vld [vmem:[#allocation2 + $0x530] sm:$0xff] }
  0xa7   :  { %v493_v48 = vld [vmem:[#allocation5 + $0x528] sm:$0xff]  ;;  %v494_v51 = vld [vmem:[#allocation5 + $0x530] sm:$0xff]  ;;  %v207_v52 = vld [vmem:[#allocation2 + $0x538] sm:$0xff] }
  0xa8   :  { %1066 = vst [vmem:[#allocation7 + $0x510] sm:$0xff] %v778_v41  ;;  %v781_v50 = vadd.f32 %v493_v48, %v205_v47  ;;  %v495_v53 = vld [vmem:[#allocation5 + $0x538] sm:$0xff]  ;;  %1067 = vst [vmem:[#allocation7 + $0x518] sm:$0xff] %v779_v45  ;;  %v782_v54 = vadd.f32 %v494_v51, %v206_v49  ;;  %v208_v56 = vld [vmem:[#allocation2 + $0x540] sm:$0xff] }
  0xa9   :  { %1068 = vst [vmem:[#allocation7 + $0x520] sm:$0xff] %v780_v46  ;;  %v783_v55 = vadd.f32 %v495_v53, %v207_v52  ;;  %v496_v57 = vld [vmem:[#allocation5 + $0x540] sm:$0xff]  ;;  %v209_v58 = vld [vmem:[#allocation2 + $0x548] sm:$0xff]  ;;  %v210_v61 = vld [vmem:[#allocation2 + $0x550] sm:$0xff] }
  0xaa   :  { %1069 = vst [vmem:[#allocation7 + $0x528] sm:$0xff] %v781_v50  ;;  %v784_v59 = vadd.f32 %v496_v57, %v208_v56  ;;  %v497_v60 = vld [vmem:[#allocation5 + $0x548] sm:$0xff]  ;;  %v498_v62 = vld [vmem:[#allocation5 + $0x550] sm:$0xff]  ;;  %1070 = vst [vmem:[#allocation7 + $0x530] sm:$0xff] %v782_v54 }
  0xab   :  { %1071 = vst [vmem:[#allocation7 + $0x538] sm:$0xff] %v783_v55  ;;  %v785_v63 = vadd.f32 %v497_v60, %v209_v58  ;;  %v786_v0 = vadd.f32 %v498_v62, %v210_v61  ;;  %v211_v1 = vld [vmem:[#allocation2 + $0x558] sm:$0xff]  ;;  %v212_v3 = vld [vmem:[#allocation2 + $0x560] sm:$0xff]  ;;  %v213_v6 = vld [vmem:[#allocation2 + $0x568] sm:$0xff] }
  0xac   :  { %v499_v2 = vld [vmem:[#allocation5 + $0x558] sm:$0xff]  ;;  %1072 = vst [vmem:[#allocation7 + $0x540] sm:$0xff] %v784_v59  ;;  %v500_v5 = vld [vmem:[#allocation5 + $0x560] sm:$0xff]  ;;  %v501_v7 = vld [vmem:[#allocation5 + $0x568] sm:$0xff] }
  0xad   :  { %v787_v4 = vadd.f32 %v499_v2, %v211_v1  ;;  %1073 = vst [vmem:[#allocation7 + $0x548] sm:$0xff] %v785_v63  ;;  %1074 = vst [vmem:[#allocation7 + $0x550] sm:$0xff] %v786_v0  ;;  %v788_v8 = vadd.f32 %v500_v5, %v212_v3  ;;  %v789_v9 = vadd.f32 %v501_v7, %v213_v6  ;;  %v214_v10 = vld [vmem:[#allocation2 + $0x570] sm:$0xff]  ;;  %v215_v12 = vld [vmem:[#allocation2 + $0x578] sm:$0xff] }
  0xae   :  { %v502_v11 = vld [vmem:[#allocation5 + $0x570] sm:$0xff]  ;;  %v503_v14 = vld [vmem:[#allocation5 + $0x578] sm:$0xff]  ;;  %v216_v15 = vld [vmem:[#allocation2 + $0x580] sm:$0xff] }
  0xaf   :  { %1075 = vst [vmem:[#allocation7 + $0x558] sm:$0xff] %v787_v4  ;;  %v790_v13 = vadd.f32 %v502_v11, %v214_v10  ;;  %v504_v16 = vld [vmem:[#allocation5 + $0x580] sm:$0xff]  ;;  %1076 = vst [vmem:[#allocation7 + $0x560] sm:$0xff] %v788_v8  ;;  %v791_v17 = vadd.f32 %v503_v14, %v215_v12  ;;  %v217_v19 = vld [vmem:[#allocation2 + $0x588] sm:$0xff] }
  0xb0   :  { %1077 = vst [vmem:[#allocation7 + $0x568] sm:$0xff] %v789_v9  ;;  %v792_v18 = vadd.f32 %v504_v16, %v216_v15  ;;  %v505_v20 = vld [vmem:[#allocation5 + $0x588] sm:$0xff]  ;;  %v218_v21 = vld [vmem:[#allocation2 + $0x590] sm:$0xff]  ;;  %v219_v24 = vld [vmem:[#allocation2 + $0x598] sm:$0xff] }
  0xb1   :  { %1078 = vst [vmem:[#allocation7 + $0x570] sm:$0xff] %v790_v13  ;;  %v793_v22 = vadd.f32 %v505_v20, %v217_v19  ;;  %v506_v23 = vld [vmem:[#allocation5 + $0x590] sm:$0xff]  ;;  %v507_v25 = vld [vmem:[#allocation5 + $0x598] sm:$0xff]  ;;  %1079 = vst [vmem:[#allocation7 + $0x578] sm:$0xff] %v791_v17 }
  0xb2   :  { %1080 = vst [vmem:[#allocation7 + $0x580] sm:$0xff] %v792_v18  ;;  %v794_v26 = vadd.f32 %v506_v23, %v218_v21  ;;  %v795_v27 = vadd.f32 %v507_v25, %v219_v24  ;;  %v220_v28 = vld [vmem:[#allocation2 + $0x5a0] sm:$0xff]  ;;  %v221_v30 = vld [vmem:[#allocation2 + $0x5a8] sm:$0xff]  ;;  %v222_v33 = vld [vmem:[#allocation2 + $0x5b0] sm:$0xff] }
  0xb3   :  { %v508_v29 = vld [vmem:[#allocation5 + $0x5a0] sm:$0xff]  ;;  %1081 = vst [vmem:[#allocation7 + $0x588] sm:$0xff] %v793_v22  ;;  %v509_v32 = vld [vmem:[#allocation5 + $0x5a8] sm:$0xff]  ;;  %v510_v34 = vld [vmem:[#allocation5 + $0x5b0] sm:$0xff] }
  0xb4   :  { %v796_v31 = vadd.f32 %v508_v29, %v220_v28  ;;  %1082 = vst [vmem:[#allocation7 + $0x590] sm:$0xff] %v794_v26  ;;  %1083 = vst [vmem:[#allocation7 + $0x598] sm:$0xff] %v795_v27  ;;  %v797_v35 = vadd.f32 %v509_v32, %v221_v30  ;;  %v798_v36 = vadd.f32 %v510_v34, %v222_v33  ;;  %v223_v37 = vld [vmem:[#allocation2 + $0x5b8] sm:$0xff]  ;;  %v224_v39 = vld [vmem:[#allocation2 + $0x5c0] sm:$0xff] }
  0xb5   :  { %v511_v38 = vld [vmem:[#allocation5 + $0x5b8] sm:$0xff]  ;;  %v512_v41 = vld [vmem:[#allocation5 + $0x5c0] sm:$0xff]  ;;  %v225_v42 = vld [vmem:[#allocation2 + $0x5c8] sm:$0xff] }
  0xb6   :  { %1084 = vst [vmem:[#allocation7 + $0x5a0] sm:$0xff] %v796_v31  ;;  %v799_v40 = vadd.f32 %v511_v38, %v223_v37  ;;  %v513_v43 = vld [vmem:[#allocation5 + $0x5c8] sm:$0xff]  ;;  %1085 = vst [vmem:[#allocation7 + $0x5a8] sm:$0xff] %v797_v35  ;;  %v800_v44 = vadd.f32 %v512_v41, %v224_v39  ;;  %v226_v46 = vld [vmem:[#allocation2 + $0x5d0] sm:$0xff] }
  0xb7   :  { %1086 = vst [vmem:[#allocation7 + $0x5b0] sm:$0xff] %v798_v36  ;;  %v801_v45 = vadd.f32 %v513_v43, %v225_v42  ;;  %v514_v47 = vld [vmem:[#allocation5 + $0x5d0] sm:$0xff]  ;;  %v227_v48 = vld [vmem:[#allocation2 + $0x5d8] sm:$0xff]  ;;  %v228_v51 = vld [vmem:[#allocation2 + $0x5e0] sm:$0xff] }
  0xb8   :  { %1087 = vst [vmem:[#allocation7 + $0x5b8] sm:$0xff] %v799_v40  ;;  %v802_v49 = vadd.f32 %v514_v47, %v226_v46  ;;  %v515_v50 = vld [vmem:[#allocation5 + $0x5d8] sm:$0xff]  ;;  %v516_v52 = vld [vmem:[#allocation5 + $0x5e0] sm:$0xff]  ;;  %1088 = vst [vmem:[#allocation7 + $0x5c0] sm:$0xff] %v800_v44 }
  0xb9   :  { %1089 = vst [vmem:[#allocation7 + $0x5c8] sm:$0xff] %v801_v45  ;;  %v803_v53 = vadd.f32 %v515_v50, %v227_v48  ;;  %v804_v54 = vadd.f32 %v516_v52, %v228_v51  ;;  %v229_v55 = vld [vmem:[#allocation2 + $0x5e8] sm:$0xff]  ;;  %v230_v57 = vld [vmem:[#allocation2 + $0x5f0] sm:$0xff]  ;;  %v231_v60 = vld [vmem:[#allocation2 + $0x5f8] sm:$0xff] }
  0xba   :  { %v517_v56 = vld [vmem:[#allocation5 + $0x5e8] sm:$0xff]  ;;  %1090 = vst [vmem:[#allocation7 + $0x5d0] sm:$0xff] %v802_v49  ;;  %v518_v59 = vld [vmem:[#allocation5 + $0x5f0] sm:$0xff]  ;;  %v519_v61 = vld [vmem:[#allocation5 + $0x5f8] sm:$0xff] }
  0xbb   :  { %v805_v58 = vadd.f32 %v517_v56, %v229_v55  ;;  %1091 = vst [vmem:[#allocation7 + $0x5d8] sm:$0xff] %v803_v53  ;;  %1092 = vst [vmem:[#allocation7 + $0x5e0] sm:$0xff] %v804_v54  ;;  %v806_v62 = vadd.f32 %v518_v59, %v230_v57  ;;  %v807_v63 = vadd.f32 %v519_v61, %v231_v60  ;;  %v232_v0 = vld [vmem:[#allocation2 + $0x600] sm:$0xff]  ;;  %v233_v2 = vld [vmem:[#allocation2 + $0x608] sm:$0xff] }
  0xbc   :  { %v520_v1 = vld [vmem:[#allocation5 + $0x600] sm:$0xff]  ;;  %v521_v4 = vld [vmem:[#allocation5 + $0x608] sm:$0xff]  ;;  %v234_v5 = vld [vmem:[#allocation2 + $0x610] sm:$0xff] }
  0xbd   :  { %1093 = vst [vmem:[#allocation7 + $0x5e8] sm:$0xff] %v805_v58  ;;  %v808_v3 = vadd.f32 %v520_v1, %v232_v0  ;;  %v522_v6 = vld [vmem:[#allocation5 + $0x610] sm:$0xff]  ;;  %1094 = vst [vmem:[#allocation7 + $0x5f0] sm:$0xff] %v806_v62  ;;  %v809_v7 = vadd.f32 %v521_v4, %v233_v2  ;;  %v235_v9 = vld [vmem:[#allocation2 + $0x618] sm:$0xff] }
  0xbe   :  { %1095 = vst [vmem:[#allocation7 + $0x5f8] sm:$0xff] %v807_v63  ;;  %v810_v8 = vadd.f32 %v522_v6, %v234_v5  ;;  %v523_v10 = vld [vmem:[#allocation5 + $0x618] sm:$0xff]  ;;  %v236_v11 = vld [vmem:[#allocation2 + $0x620] sm:$0xff]  ;;  %v237_v14 = vld [vmem:[#allocation2 + $0x628] sm:$0xff] }
  0xbf   :  { %1096 = vst [vmem:[#allocation7 + $0x600] sm:$0xff] %v808_v3  ;;  %v811_v12 = vadd.f32 %v523_v10, %v235_v9  ;;  %v524_v13 = vld [vmem:[#allocation5 + $0x620] sm:$0xff]  ;;  %v525_v15 = vld [vmem:[#allocation5 + $0x628] sm:$0xff]  ;;  %1097 = vst [vmem:[#allocation7 + $0x608] sm:$0xff] %v809_v7 }
  0xc0   :  { %1098 = vst [vmem:[#allocation7 + $0x610] sm:$0xff] %v810_v8  ;;  %v812_v16 = vadd.f32 %v524_v13, %v236_v11  ;;  %v813_v17 = vadd.f32 %v525_v15, %v237_v14  ;;  %v238_v18 = vld [vmem:[#allocation2 + $0x630] sm:$0xff]  ;;  %v239_v20 = vld [vmem:[#allocation2 + $0x638] sm:$0xff]  ;;  %v240_v23 = vld [vmem:[#allocation2 + $0x640] sm:$0xff] }
  0xc1   :  { %v526_v19 = vld [vmem:[#allocation5 + $0x630] sm:$0xff]  ;;  %1099 = vst [vmem:[#allocation7 + $0x618] sm:$0xff] %v811_v12  ;;  %v527_v22 = vld [vmem:[#allocation5 + $0x638] sm:$0xff]  ;;  %v528_v24 = vld [vmem:[#allocation5 + $0x640] sm:$0xff] }
  0xc2   :  { %v814_v21 = vadd.f32 %v526_v19, %v238_v18  ;;  %1100 = vst [vmem:[#allocation7 + $0x620] sm:$0xff] %v812_v16  ;;  %1101 = vst [vmem:[#allocation7 + $0x628] sm:$0xff] %v813_v17  ;;  %v815_v25 = vadd.f32 %v527_v22, %v239_v20  ;;  %v816_v26 = vadd.f32 %v528_v24, %v240_v23  ;;  %v241_v27 = vld [vmem:[#allocation2 + $0x648] sm:$0xff]  ;;  %v242_v29 = vld [vmem:[#allocation2 + $0x650] sm:$0xff] }
  0xc3   :  { %v529_v28 = vld [vmem:[#allocation5 + $0x648] sm:$0xff]  ;;  %v530_v31 = vld [vmem:[#allocation5 + $0x650] sm:$0xff]  ;;  %v243_v32 = vld [vmem:[#allocation2 + $0x658] sm:$0xff] }
  0xc4   :  { %1102 = vst [vmem:[#allocation7 + $0x630] sm:$0xff] %v814_v21  ;;  %v817_v30 = vadd.f32 %v529_v28, %v241_v27  ;;  %v531_v33 = vld [vmem:[#allocation5 + $0x658] sm:$0xff]  ;;  %1103 = vst [vmem:[#allocation7 + $0x638] sm:$0xff] %v815_v25  ;;  %v818_v34 = vadd.f32 %v530_v31, %v242_v29  ;;  %v244_v36 = vld [vmem:[#allocation2 + $0x660] sm:$0xff] }
  0xc5   :  { %1104 = vst [vmem:[#allocation7 + $0x640] sm:$0xff] %v816_v26  ;;  %v819_v35 = vadd.f32 %v531_v33, %v243_v32  ;;  %v532_v37 = vld [vmem:[#allocation5 + $0x660] sm:$0xff]  ;;  %v245_v38 = vld [vmem:[#allocation2 + $0x668] sm:$0xff]  ;;  %v246_v41 = vld [vmem:[#allocation2 + $0x670] sm:$0xff] }
  0xc6   :  { %1105 = vst [vmem:[#allocation7 + $0x648] sm:$0xff] %v817_v30  ;;  %v820_v39 = vadd.f32 %v532_v37, %v244_v36  ;;  %v533_v40 = vld [vmem:[#allocation5 + $0x668] sm:$0xff]  ;;  %v534_v42 = vld [vmem:[#allocation5 + $0x670] sm:$0xff]  ;;  %1106 = vst [vmem:[#allocation7 + $0x650] sm:$0xff] %v818_v34 }
  0xc7   :  { %1107 = vst [vmem:[#allocation7 + $0x658] sm:$0xff] %v819_v35  ;;  %v821_v43 = vadd.f32 %v533_v40, %v245_v38  ;;  %v822_v44 = vadd.f32 %v534_v42, %v246_v41  ;;  %v247_v45 = vld [vmem:[#allocation2 + $0x678] sm:$0xff]  ;;  %v248_v47 = vld [vmem:[#allocation2 + $0x680] sm:$0xff]  ;;  %v249_v50 = vld [vmem:[#allocation2 + $0x688] sm:$0xff] }
  0xc8   :  { %v535_v46 = vld [vmem:[#allocation5 + $0x678] sm:$0xff]  ;;  %1108 = vst [vmem:[#allocation7 + $0x660] sm:$0xff] %v820_v39  ;;  %v536_v49 = vld [vmem:[#allocation5 + $0x680] sm:$0xff]  ;;  %v537_v51 = vld [vmem:[#allocation5 + $0x688] sm:$0xff] }
  0xc9   :  { %v823_v48 = vadd.f32 %v535_v46, %v247_v45  ;;  %1109 = vst [vmem:[#allocation7 + $0x668] sm:$0xff] %v821_v43  ;;  %1110 = vst [vmem:[#allocation7 + $0x670] sm:$0xff] %v822_v44  ;;  %v824_v52 = vadd.f32 %v536_v49, %v248_v47  ;;  %v825_v53 = vadd.f32 %v537_v51, %v249_v50  ;;  %v250_v54 = vld [vmem:[#allocation2 + $0x690] sm:$0xff]  ;;  %v251_v56 = vld [vmem:[#allocation2 + $0x698] sm:$0xff] }
  0xca   :  { %v538_v55 = vld [vmem:[#allocation5 + $0x690] sm:$0xff]  ;;  %v539_v58 = vld [vmem:[#allocation5 + $0x698] sm:$0xff]  ;;  %v252_v59 = vld [vmem:[#allocation2 + $0x6a0] sm:$0xff] }
  0xcb   :  { %1111 = vst [vmem:[#allocation7 + $0x678] sm:$0xff] %v823_v48  ;;  %v826_v57 = vadd.f32 %v538_v55, %v250_v54  ;;  %v540_v60 = vld [vmem:[#allocation5 + $0x6a0] sm:$0xff]  ;;  %1112 = vst [vmem:[#allocation7 + $0x680] sm:$0xff] %v824_v52  ;;  %v827_v61 = vadd.f32 %v539_v58, %v251_v56  ;;  %v253_v63 = vld [vmem:[#allocation2 + $0x6a8] sm:$0xff] }
  0xcc   :  { %1113 = vst [vmem:[#allocation7 + $0x688] sm:$0xff] %v825_v53  ;;  %v828_v62 = vadd.f32 %v540_v60, %v252_v59  ;;  %v541_v0 = vld [vmem:[#allocation5 + $0x6a8] sm:$0xff]  ;;  %v254_v1 = vld [vmem:[#allocation2 + $0x6b0] sm:$0xff]  ;;  %v255_v4 = vld [vmem:[#allocation2 + $0x6b8] sm:$0xff] }
  0xcd   :  { %1114 = vst [vmem:[#allocation7 + $0x690] sm:$0xff] %v826_v57  ;;  %v829_v2 = vadd.f32 %v541_v0, %v253_v63  ;;  %v542_v3 = vld [vmem:[#allocation5 + $0x6b0] sm:$0xff]  ;;  %v543_v5 = vld [vmem:[#allocation5 + $0x6b8] sm:$0xff]  ;;  %1115 = vst [vmem:[#allocation7 + $0x698] sm:$0xff] %v827_v61 }
  0xce   :  { %1116 = vst [vmem:[#allocation7 + $0x6a0] sm:$0xff] %v828_v62  ;;  %v830_v6 = vadd.f32 %v542_v3, %v254_v1  ;;  %v831_v7 = vadd.f32 %v543_v5, %v255_v4  ;;  %v256_v8 = vld [vmem:[#allocation2 + $0x6c0] sm:$0xff]  ;;  %v257_v10 = vld [vmem:[#allocation2 + $0x6c8] sm:$0xff]  ;;  %v258_v13 = vld [vmem:[#allocation2 + $0x6d0] sm:$0xff] }
  0xcf   :  { %v544_v9 = vld [vmem:[#allocation5 + $0x6c0] sm:$0xff]  ;;  %1117 = vst [vmem:[#allocation7 + $0x6a8] sm:$0xff] %v829_v2  ;;  %v545_v12 = vld [vmem:[#allocation5 + $0x6c8] sm:$0xff]  ;;  %v546_v14 = vld [vmem:[#allocation5 + $0x6d0] sm:$0xff] }
  0xd0   :  { %v832_v11 = vadd.f32 %v544_v9, %v256_v8  ;;  %1118 = vst [vmem:[#allocation7 + $0x6b0] sm:$0xff] %v830_v6  ;;  %1119 = vst [vmem:[#allocation7 + $0x6b8] sm:$0xff] %v831_v7  ;;  %v833_v15 = vadd.f32 %v545_v12, %v257_v10  ;;  %v834_v16 = vadd.f32 %v546_v14, %v258_v13  ;;  %v259_v17 = vld [vmem:[#allocation2 + $0x6d8] sm:$0xff]  ;;  %v260_v19 = vld [vmem:[#allocation2 + $0x6e0] sm:$0xff] }
  0xd1   :  { %v547_v18 = vld [vmem:[#allocation5 + $0x6d8] sm:$0xff]  ;;  %v548_v21 = vld [vmem:[#allocation5 + $0x6e0] sm:$0xff]  ;;  %v261_v22 = vld [vmem:[#allocation2 + $0x6e8] sm:$0xff] }
  0xd2   :  { %1120 = vst [vmem:[#allocation7 + $0x6c0] sm:$0xff] %v832_v11  ;;  %v835_v20 = vadd.f32 %v547_v18, %v259_v17  ;;  %v549_v23 = vld [vmem:[#allocation5 + $0x6e8] sm:$0xff]  ;;  %1121 = vst [vmem:[#allocation7 + $0x6c8] sm:$0xff] %v833_v15  ;;  %v836_v24 = vadd.f32 %v548_v21, %v260_v19  ;;  %v262_v26 = vld [vmem:[#allocation2 + $0x6f0] sm:$0xff] }
  0xd3   :  { %1122 = vst [vmem:[#allocation7 + $0x6d0] sm:$0xff] %v834_v16  ;;  %v837_v25 = vadd.f32 %v549_v23, %v261_v22  ;;  %v550_v27 = vld [vmem:[#allocation5 + $0x6f0] sm:$0xff]  ;;  %v263_v28 = vld [vmem:[#allocation2 + $0x6f8] sm:$0xff]  ;;  %v264_v31 = vld [vmem:[#allocation2 + $0x700] sm:$0xff] }
  0xd4   :  { %1123 = vst [vmem:[#allocation7 + $0x6d8] sm:$0xff] %v835_v20  ;;  %v838_v29 = vadd.f32 %v550_v27, %v262_v26  ;;  %v551_v30 = vld [vmem:[#allocation5 + $0x6f8] sm:$0xff]  ;;  %v552_v32 = vld [vmem:[#allocation5 + $0x700] sm:$0xff]  ;;  %1124 = vst [vmem:[#allocation7 + $0x6e0] sm:$0xff] %v836_v24 }
  0xd5   :  { %1125 = vst [vmem:[#allocation7 + $0x6e8] sm:$0xff] %v837_v25  ;;  %v839_v33 = vadd.f32 %v551_v30, %v263_v28  ;;  %v840_v34 = vadd.f32 %v552_v32, %v264_v31  ;;  %v265_v35 = vld [vmem:[#allocation2 + $0x708] sm:$0xff]  ;;  %v266_v37 = vld [vmem:[#allocation2 + $0x710] sm:$0xff]  ;;  %v267_v40 = vld [vmem:[#allocation2 + $0x718] sm:$0xff] }
  0xd6   :  { %v553_v36 = vld [vmem:[#allocation5 + $0x708] sm:$0xff]  ;;  %1126 = vst [vmem:[#allocation7 + $0x6f0] sm:$0xff] %v838_v29  ;;  %v554_v39 = vld [vmem:[#allocation5 + $0x710] sm:$0xff]  ;;  %v555_v41 = vld [vmem:[#allocation5 + $0x718] sm:$0xff] }
  0xd7   :  { %v841_v38 = vadd.f32 %v553_v36, %v265_v35  ;;  %1127 = vst [vmem:[#allocation7 + $0x6f8] sm:$0xff] %v839_v33  ;;  %1128 = vst [vmem:[#allocation7 + $0x700] sm:$0xff] %v840_v34  ;;  %v842_v42 = vadd.f32 %v554_v39, %v266_v37  ;;  %v843_v43 = vadd.f32 %v555_v41, %v267_v40  ;;  %v268_v44 = vld [vmem:[#allocation2 + $0x720] sm:$0xff]  ;;  %v269_v46 = vld [vmem:[#allocation2 + $0x728] sm:$0xff] }
  0xd8   :  { %v556_v45 = vld [vmem:[#allocation5 + $0x720] sm:$0xff]  ;;  %v557_v48 = vld [vmem:[#allocation5 + $0x728] sm:$0xff]  ;;  %v270_v49 = vld [vmem:[#allocation2 + $0x730] sm:$0xff] }
  0xd9   :  { %1129 = vst [vmem:[#allocation7 + $0x708] sm:$0xff] %v841_v38  ;;  %v844_v47 = vadd.f32 %v556_v45, %v268_v44  ;;  %v558_v50 = vld [vmem:[#allocation5 + $0x730] sm:$0xff]  ;;  %1130 = vst [vmem:[#allocation7 + $0x710] sm:$0xff] %v842_v42  ;;  %v845_v51 = vadd.f32 %v557_v48, %v269_v46  ;;  %v271_v53 = vld [vmem:[#allocation2 + $0x738] sm:$0xff] }
  0xda   :  { %1131 = vst [vmem:[#allocation7 + $0x718] sm:$0xff] %v843_v43  ;;  %v846_v52 = vadd.f32 %v558_v50, %v270_v49  ;;  %v559_v54 = vld [vmem:[#allocation5 + $0x738] sm:$0xff]  ;;  %v272_v55 = vld [vmem:[#allocation2 + $0x740] sm:$0xff]  ;;  %v273_v58 = vld [vmem:[#allocation2 + $0x748] sm:$0xff] }
  0xdb   :  { %1132 = vst [vmem:[#allocation7 + $0x720] sm:$0xff] %v844_v47  ;;  %v847_v56 = vadd.f32 %v559_v54, %v271_v53  ;;  %v560_v57 = vld [vmem:[#allocation5 + $0x740] sm:$0xff]  ;;  %v561_v59 = vld [vmem:[#allocation5 + $0x748] sm:$0xff]  ;;  %1133 = vst [vmem:[#allocation7 + $0x728] sm:$0xff] %v845_v51 }
  0xdc   :  { %1134 = vst [vmem:[#allocation7 + $0x730] sm:$0xff] %v846_v52  ;;  %v848_v60 = vadd.f32 %v560_v57, %v272_v55  ;;  %v849_v61 = vadd.f32 %v561_v59, %v273_v58  ;;  %v274_v62 = vld [vmem:[#allocation2 + $0x750] sm:$0xff]  ;;  %v275_v0 = vld [vmem:[#allocation2 + $0x758] sm:$0xff]  ;;  %v276_v3 = vld [vmem:[#allocation2 + $0x760] sm:$0xff] }
  0xdd   :  { %v562_v63 = vld [vmem:[#allocation5 + $0x750] sm:$0xff]  ;;  %1135 = vst [vmem:[#allocation7 + $0x738] sm:$0xff] %v847_v56  ;;  %v563_v2 = vld [vmem:[#allocation5 + $0x758] sm:$0xff]  ;;  %v564_v4 = vld [vmem:[#allocation5 + $0x760] sm:$0xff] }
  0xde   :  { %v850_v1 = vadd.f32 %v562_v63, %v274_v62  ;;  %1136 = vst [vmem:[#allocation7 + $0x740] sm:$0xff] %v848_v60  ;;  %1137 = vst [vmem:[#allocation7 + $0x748] sm:$0xff] %v849_v61  ;;  %v851_v5 = vadd.f32 %v563_v2, %v275_v0  ;;  %v852_v6 = vadd.f32 %v564_v4, %v276_v3  ;;  %v277_v7 = vld [vmem:[#allocation2 + $0x768] sm:$0xff]  ;;  %v278_v9 = vld [vmem:[#allocation2 + $0x770] sm:$0xff] }
  0xdf   :  { %v565_v8 = vld [vmem:[#allocation5 + $0x768] sm:$0xff]  ;;  %v566_v11 = vld [vmem:[#allocation5 + $0x770] sm:$0xff]  ;;  %v279_v12 = vld [vmem:[#allocation2 + $0x778] sm:$0xff] }
  0xe0   :  { %1138 = vst [vmem:[#allocation7 + $0x750] sm:$0xff] %v850_v1  ;;  %v853_v10 = vadd.f32 %v565_v8, %v277_v7  ;;  %v567_v13 = vld [vmem:[#allocation5 + $0x778] sm:$0xff]  ;;  %1139 = vst [vmem:[#allocation7 + $0x758] sm:$0xff] %v851_v5  ;;  %v854_v14 = vadd.f32 %v566_v11, %v278_v9  ;;  %v280_v16 = vld [vmem:[#allocation2 + $0x780] sm:$0xff] }
  0xe1   :  { %1140 = vst [vmem:[#allocation7 + $0x760] sm:$0xff] %v852_v6  ;;  %v855_v15 = vadd.f32 %v567_v13, %v279_v12  ;;  %v568_v17 = vld [vmem:[#allocation5 + $0x780] sm:$0xff]  ;;  %v281_v18 = vld [vmem:[#allocation2 + $0x788] sm:$0xff]  ;;  %v282_v21 = vld [vmem:[#allocation2 + $0x790] sm:$0xff] }
  0xe2   :  { %1141 = vst [vmem:[#allocation7 + $0x768] sm:$0xff] %v853_v10  ;;  %v856_v19 = vadd.f32 %v568_v17, %v280_v16  ;;  %v569_v20 = vld [vmem:[#allocation5 + $0x788] sm:$0xff]  ;;  %v570_v22 = vld [vmem:[#allocation5 + $0x790] sm:$0xff]  ;;  %1142 = vst [vmem:[#allocation7 + $0x770] sm:$0xff] %v854_v14 }
  0xe3   :  { %1143 = vst [vmem:[#allocation7 + $0x778] sm:$0xff] %v855_v15  ;;  %v857_v23 = vadd.f32 %v569_v20, %v281_v18  ;;  %v858_v24 = vadd.f32 %v570_v22, %v282_v21  ;;  %v283_v25 = vld [vmem:[#allocation2 + $0x798] sm:$0xff]  ;;  %v284_v27 = vld [vmem:[#allocation2 + $0x7a0] sm:$0xff]  ;;  %v285_v30 = vld [vmem:[#allocation2 + $0x7a8] sm:$0xff] }
  0xe4   :  { %v571_v26 = vld [vmem:[#allocation5 + $0x798] sm:$0xff]  ;;  %1144 = vst [vmem:[#allocation7 + $0x780] sm:$0xff] %v856_v19  ;;  %v572_v29 = vld [vmem:[#allocation5 + $0x7a0] sm:$0xff]  ;;  %v573_v31 = vld [vmem:[#allocation5 + $0x7a8] sm:$0xff] }
  0xe5   :  { %v859_v28 = vadd.f32 %v571_v26, %v283_v25  ;;  %1145 = vst [vmem:[#allocation7 + $0x788] sm:$0xff] %v857_v23  ;;  %1146 = vst [vmem:[#allocation7 + $0x790] sm:$0xff] %v858_v24  ;;  %v860_v32 = vadd.f32 %v572_v29, %v284_v27  ;;  %v861_v33 = vadd.f32 %v573_v31, %v285_v30  ;;  %v286_v34 = vld [vmem:[#allocation2 + $0x7b0] sm:$0xff]  ;;  %v287_v36 = vld [vmem:[#allocation2 + $0x7b8] sm:$0xff] }
  0xe6   :  { %v574_v35 = vld [vmem:[#allocation5 + $0x7b0] sm:$0xff]  ;;  %v575_v38 = vld [vmem:[#allocation5 + $0x7b8] sm:$0xff]  ;;  %v288_v39 = vld [vmem:[#allocation2 + $0x7c0] sm:$0xff] }
  0xe7   :  { %1147 = vst [vmem:[#allocation7 + $0x798] sm:$0xff] %v859_v28  ;;  %v862_v37 = vadd.f32 %v574_v35, %v286_v34  ;;  %v576_v40 = vld [vmem:[#allocation5 + $0x7c0] sm:$0xff]  ;;  %1148 = vst [vmem:[#allocation7 + $0x7a0] sm:$0xff] %v860_v32  ;;  %v863_v41 = vadd.f32 %v575_v38, %v287_v36  ;;  %v289_v43 = vld [vmem:[#allocation2 + $0x7c8] sm:$0xff] }
  0xe8   :  { %1149 = vst [vmem:[#allocation7 + $0x7a8] sm:$0xff] %v861_v33  ;;  %v864_v42 = vadd.f32 %v576_v40, %v288_v39  ;;  %v577_v44 = vld [vmem:[#allocation5 + $0x7c8] sm:$0xff]  ;;  %v290_v45 = vld [vmem:[#allocation2 + $0x7d0] sm:$0xff]  ;;  %v291_v48 = vld [vmem:[#allocation2 + $0x7d8] sm:$0xff] }
  0xe9   :  { %1150 = vst [vmem:[#allocation7 + $0x7b0] sm:$0xff] %v862_v37  ;;  %v865_v46 = vadd.f32 %v577_v44, %v289_v43  ;;  %v578_v47 = vld [vmem:[#allocation5 + $0x7d0] sm:$0xff]  ;;  %v579_v49 = vld [vmem:[#allocation5 + $0x7d8] sm:$0xff]  ;;  %1151 = vst [vmem:[#allocation7 + $0x7b8] sm:$0xff] %v863_v41 }
  0xea   :  { %1152 = vst [vmem:[#allocation7 + $0x7c0] sm:$0xff] %v864_v42  ;;  %v866_v50 = vadd.f32 %v578_v47, %v290_v45  ;;  %v867_v51 = vadd.f32 %v579_v49, %v291_v48  ;;  %v292_v52 = vld [vmem:[#allocation2 + $0x7e0] sm:$0xff]  ;;  %v293_v54 = vld [vmem:[#allocation2 + $0x7e8] sm:$0xff]  ;;  %v294_v57 = vld [vmem:[#allocation2 + $0x7f0] sm:$0xff] }
  0xeb   :  { %v580_v53 = vld [vmem:[#allocation5 + $0x7e0] sm:$0xff]  ;;  %1153 = vst [vmem:[#allocation7 + $0x7c8] sm:$0xff] %v865_v46  ;;  %v581_v56 = vld [vmem:[#allocation5 + $0x7e8] sm:$0xff]  ;;  %v582_v58 = vld [vmem:[#allocation5 + $0x7f0] sm:$0xff] }
  0xec   :  { %v868_v55 = vadd.f32 %v580_v53, %v292_v52  ;;  %1154 = vst [vmem:[#allocation7 + $0x7d0] sm:$0xff] %v866_v50  ;;  %1155 = vst [vmem:[#allocation7 + $0x7d8] sm:$0xff] %v867_v51  ;;  %v869_v59 = vadd.f32 %v581_v56, %v293_v54  ;;  %v870_v60 = vadd.f32 %v582_v58, %v294_v57  ;;  %v295_v61 = vld [vmem:[#allocation2 + $0x7f8] sm:$0xff]  ;;  %v296_v63 = vld [vmem:[#allocation2 + $0x800] sm:$0xff] }
  0xed   :  { %v583_v62 = vld [vmem:[#allocation5 + $0x7f8] sm:$0xff]  ;;  %v584_v1 = vld [vmem:[#allocation5 + $0x800] sm:$0xff]  ;;  %v297_v2 = vld [vmem:[#allocation2 + $0x808] sm:$0xff] }
  0xee   :  { %1156 = vst [vmem:[#allocation7 + $0x7e0] sm:$0xff] %v868_v55  ;;  %v871_v0 = vadd.f32 %v583_v62, %v295_v61  ;;  %v585_v3 = vld [vmem:[#allocation5 + $0x808] sm:$0xff]  ;;  %1157 = vst [vmem:[#allocation7 + $0x7e8] sm:$0xff] %v869_v59  ;;  %v872_v4 = vadd.f32 %v584_v1, %v296_v63  ;;  %v298_v6 = vld [vmem:[#allocation2 + $0x810] sm:$0xff] }
  0xef   :  { %1158 = vst [vmem:[#allocation7 + $0x7f0] sm:$0xff] %v870_v60  ;;  %v873_v5 = vadd.f32 %v585_v3, %v297_v2  ;;  %v586_v7 = vld [vmem:[#allocation5 + $0x810] sm:$0xff]  ;;  %v299_v8 = vld [vmem:[#allocation2 + $0x818] sm:$0xff]  ;;  %v300_v11 = vld [vmem:[#allocation2 + $0x820] sm:$0xff] }
  0xf0   :  { %1159 = vst [vmem:[#allocation7 + $0x7f8] sm:$0xff] %v871_v0  ;;  %v874_v9 = vadd.f32 %v586_v7, %v298_v6  ;;  %v587_v10 = vld [vmem:[#allocation5 + $0x818] sm:$0xff]  ;;  %v588_v12 = vld [vmem:[#allocation5 + $0x820] sm:$0xff]  ;;  %1160 = vst [vmem:[#allocation7 + $0x800] sm:$0xff] %v872_v4 }
  0xf1   :  { %1161 = vst [vmem:[#allocation7 + $0x808] sm:$0xff] %v873_v5  ;;  %v875_v13 = vadd.f32 %v587_v10, %v299_v8  ;;  %v876_v14 = vadd.f32 %v588_v12, %v300_v11  ;;  %v301_v15 = vld [vmem:[#allocation2 + $0x828] sm:$0xff]  ;;  %v302_v17 = vld [vmem:[#allocation2 + $0x830] sm:$0xff]  ;;  %v303_v20 = vld [vmem:[#allocation2 + $0x838] sm:$0xff] }
  0xf2   :  { %v589_v16 = vld [vmem:[#allocation5 + $0x828] sm:$0xff]  ;;  %1162 = vst [vmem:[#allocation7 + $0x810] sm:$0xff] %v874_v9  ;;  %v590_v19 = vld [vmem:[#allocation5 + $0x830] sm:$0xff]  ;;  %v591_v21 = vld [vmem:[#allocation5 + $0x838] sm:$0xff] }
  0xf3   :  { %v877_v18 = vadd.f32 %v589_v16, %v301_v15  ;;  %1163 = vst [vmem:[#allocation7 + $0x818] sm:$0xff] %v875_v13  ;;  %1164 = vst [vmem:[#allocation7 + $0x820] sm:$0xff] %v876_v14  ;;  %v878_v22 = vadd.f32 %v590_v19, %v302_v17  ;;  %v879_v23 = vadd.f32 %v591_v21, %v303_v20  ;;  %v304_v24 = vld [vmem:[#allocation2 + $0x840] sm:$0xff]  ;;  %v305_v26 = vld [vmem:[#allocation2 + $0x848] sm:$0xff] }
  0xf4   :  { %v592_v25 = vld [vmem:[#allocation5 + $0x840] sm:$0xff]  ;;  %v593_v28 = vld [vmem:[#allocation5 + $0x848] sm:$0xff]  ;;  %v306_v29 = vld [vmem:[#allocation2 + $0x850] sm:$0xff] }
  0xf5   :  { %1165 = vst [vmem:[#allocation7 + $0x828] sm:$0xff] %v877_v18  ;;  %v880_v27 = vadd.f32 %v592_v25, %v304_v24  ;;  %v594_v30 = vld [vmem:[#allocation5 + $0x850] sm:$0xff]  ;;  %1166 = vst [vmem:[#allocation7 + $0x830] sm:$0xff] %v878_v22  ;;  %v881_v31 = vadd.f32 %v593_v28, %v305_v26  ;;  %v307_v33 = vld [vmem:[#allocation2 + $0x858] sm:$0xff] }
  0xf6   :  { %1167 = vst [vmem:[#allocation7 + $0x838] sm:$0xff] %v879_v23  ;;  %v882_v32 = vadd.f32 %v594_v30, %v306_v29  ;;  %v595_v34 = vld [vmem:[#allocation5 + $0x858] sm:$0xff]  ;;  %v308_v35 = vld [vmem:[#allocation2 + $0x860] sm:$0xff]  ;;  %v309_v38 = vld [vmem:[#allocation2 + $0x868] sm:$0xff] }
  0xf7   :  { %1168 = vst [vmem:[#allocation7 + $0x840] sm:$0xff] %v880_v27  ;;  %v883_v36 = vadd.f32 %v595_v34, %v307_v33  ;;  %v596_v37 = vld [vmem:[#allocation5 + $0x860] sm:$0xff]  ;;  %v597_v39 = vld [vmem:[#allocation5 + $0x868] sm:$0xff]  ;;  %1169 = vst [vmem:[#allocation7 + $0x848] sm:$0xff] %v881_v31 }
  0xf8   :  { %1170 = vst [vmem:[#allocation7 + $0x850] sm:$0xff] %v882_v32  ;;  %v884_v40 = vadd.f32 %v596_v37, %v308_v35  ;;  %v885_v41 = vadd.f32 %v597_v39, %v309_v38  ;;  %v310_v42 = vld [vmem:[#allocation2 + $0x870] sm:$0xff]  ;;  %v311_v44 = vld [vmem:[#allocation2 + $0x878] sm:$0xff]  ;;  %v312_v47 = vld [vmem:[#allocation2 + $0x880] sm:$0xff] }
  0xf9   :  { %v598_v43 = vld [vmem:[#allocation5 + $0x870] sm:$0xff]  ;;  %1171 = vst [vmem:[#allocation7 + $0x858] sm:$0xff] %v883_v36  ;;  %v599_v46 = vld [vmem:[#allocation5 + $0x878] sm:$0xff]  ;;  %v600_v48 = vld [vmem:[#allocation5 + $0x880] sm:$0xff] }
  0xfa   :  { %v886_v45 = vadd.f32 %v598_v43, %v310_v42  ;;  %1172 = vst [vmem:[#allocation7 + $0x860] sm:$0xff] %v884_v40  ;;  %1173 = vst [vmem:[#allocation7 + $0x868] sm:$0xff] %v885_v41  ;;  %v887_v49 = vadd.f32 %v599_v46, %v311_v44  ;;  %v888_v50 = vadd.f32 %v600_v48, %v312_v47  ;;  %v313_v51 = vld [vmem:[#allocation2 + $0x888] sm:$0xff]  ;;  %v314_v53 = vld [vmem:[#allocation2 + $0x890] sm:$0xff] }
  0xfb   :  { %v601_v52 = vld [vmem:[#allocation5 + $0x888] sm:$0xff]  ;;  %v602_v55 = vld [vmem:[#allocation5 + $0x890] sm:$0xff]  ;;  %v315_v56 = vld [vmem:[#allocation2 + $0x898] sm:$0xff] }
  0xfc   :  { %1174 = vst [vmem:[#allocation7 + $0x870] sm:$0xff] %v886_v45  ;;  %v889_v54 = vadd.f32 %v601_v52, %v313_v51  ;;  %v603_v57 = vld [vmem:[#allocation5 + $0x898] sm:$0xff]  ;;  %1175 = vst [vmem:[#allocation7 + $0x878] sm:$0xff] %v887_v49  ;;  %v890_v58 = vadd.f32 %v602_v55, %v314_v53  ;;  %v316_v60 = vld [vmem:[#allocation2 + $0x8a0] sm:$0xff] }
  0xfd   :  { %1176 = vst [vmem:[#allocation7 + $0x880] sm:$0xff] %v888_v50  ;;  %v891_v59 = vadd.f32 %v603_v57, %v315_v56  ;;  %v604_v61 = vld [vmem:[#allocation5 + $0x8a0] sm:$0xff]  ;;  %v317_v62 = vld [vmem:[#allocation2 + $0x8a8] sm:$0xff]  ;;  %v318_v1 = vld [vmem:[#allocation2 + $0x8b0] sm:$0xff] }
  0xfe   :  { %1177 = vst [vmem:[#allocation7 + $0x888] sm:$0xff] %v889_v54  ;;  %v892_v63 = vadd.f32 %v604_v61, %v316_v60  ;;  %v605_v0 = vld [vmem:[#allocation5 + $0x8a8] sm:$0xff]  ;;  %v606_v2 = vld [vmem:[#allocation5 + $0x8b0] sm:$0xff]  ;;  %1178 = vst [vmem:[#allocation7 + $0x890] sm:$0xff] %v890_v58 }
  0xff   :  { %1179 = vst [vmem:[#allocation7 + $0x898] sm:$0xff] %v891_v59  ;;  %v893_v3 = vadd.f32 %v605_v0, %v317_v62  ;;  %v894_v4 = vadd.f32 %v606_v2, %v318_v1  ;;  %v319_v5 = vld [vmem:[#allocation2 + $0x8b8] sm:$0xff]  ;;  %v320_v7 = vld [vmem:[#allocation2 + $0x8c0] sm:$0xff]  ;;  %v321_v10 = vld [vmem:[#allocation2 + $0x8c8] sm:$0xff] }
 0x100   :  { %v607_v6 = vld [vmem:[#allocation5 + $0x8b8] sm:$0xff]  ;;  %1180 = vst [vmem:[#allocation7 + $0x8a0] sm:$0xff] %v892_v63  ;;  %v608_v9 = vld [vmem:[#allocation5 + $0x8c0] sm:$0xff]  ;;  %v609_v11 = vld [vmem:[#allocation5 + $0x8c8] sm:$0xff] }
 0x101   :  { %v895_v8 = vadd.f32 %v607_v6, %v319_v5  ;;  %1181 = vst [vmem:[#allocation7 + $0x8a8] sm:$0xff] %v893_v3  ;;  %1182 = vst [vmem:[#allocation7 + $0x8b0] sm:$0xff] %v894_v4  ;;  %v896_v12 = vadd.f32 %v608_v9, %v320_v7  ;;  %v897_v13 = vadd.f32 %v609_v11, %v321_v10  ;;  %v322_v14 = vld [vmem:[#allocation2 + $0x8d0] sm:$0xff]  ;;  %v323_v16 = vld [vmem:[#allocation2 + $0x8d8] sm:$0xff] }
 0x102   :  { %v610_v15 = vld [vmem:[#allocation5 + $0x8d0] sm:$0xff]  ;;  %v611_v18 = vld [vmem:[#allocation5 + $0x8d8] sm:$0xff]  ;;  %v324_v19 = vld [vmem:[#allocation2 + $0x8e0] sm:$0xff] }
 0x103   :  { %1183 = vst [vmem:[#allocation7 + $0x8b8] sm:$0xff] %v895_v8  ;;  %v898_v17 = vadd.f32 %v610_v15, %v322_v14  ;;  %v612_v20 = vld [vmem:[#allocation5 + $0x8e0] sm:$0xff]  ;;  %1184 = vst [vmem:[#allocation7 + $0x8c0] sm:$0xff] %v896_v12  ;;  %v899_v21 = vadd.f32 %v611_v18, %v323_v16  ;;  %v325_v23 = vld [vmem:[#allocation2 + $0x8e8] sm:$0xff] }
 0x104   :  { %1185 = vst [vmem:[#allocation7 + $0x8c8] sm:$0xff] %v897_v13  ;;  %v900_v22 = vadd.f32 %v612_v20, %v324_v19  ;;  %v613_v24 = vld [vmem:[#allocation5 + $0x8e8] sm:$0xff]  ;;  %v326_v25 = vld [vmem:[#allocation2 + $0x8f0] sm:$0xff]  ;;  %v327_v28 = vld [vmem:[#allocation2 + $0x8f8] sm:$0xff] }
 0x105   :  { %1186 = vst [vmem:[#allocation7 + $0x8d0] sm:$0xff] %v898_v17  ;;  %v901_v26 = vadd.f32 %v613_v24, %v325_v23  ;;  %v614_v27 = vld [vmem:[#allocation5 + $0x8f0] sm:$0xff]  ;;  %v615_v29 = vld [vmem:[#allocation5 + $0x8f8] sm:$0xff]  ;;  %1187 = vst [vmem:[#allocation7 + $0x8d8] sm:$0xff] %v899_v21 }
 0x106   :  { %1188 = vst [vmem:[#allocation7 + $0x8e0] sm:$0xff] %v900_v22  ;;  %v902_v30 = vadd.f32 %v614_v27, %v326_v25  ;;  %v903_v31 = vadd.f32 %v615_v29, %v327_v28 }
 0x107   :  { %1189 = vst [vmem:[#allocation7 + $0x8e8] sm:$0xff] %v901_v26 }
 0x108   :  { %1190 = vst [vmem:[#allocation7 + $0x8f0] sm:$0xff] %v902_v30  ;;  %1191 = vst [vmem:[#allocation7 + $0x8f8] sm:$0xff] %v903_v31 }
 0x109   :  { %1270 = shalt.err (!%p1267_p6)
}
 0x10a   :  { %s1271_s10 = scalar_lea.hbm %s1354_s2, 36864 }
 0x10b   :  { %p1272_p7 = scmp.ne.s32.totalorder %s1354_s2, %s1271_s10  ;;  %p1275_p8 = scmp.lt.u32.totalorder %s1271_s10, %s1354_s2 }
 0x10d   :  { %p1277_p9 = pnand %p1275_p8, %p1272_p7 }
 0x10f   :  { %1280 = shalt.err (!%p1277_p9)
}
 0x110   :  { %1203 = dma.vmem_to_hbm [thread:$0]  %s1198_s6, 36864, %s1354_s2, [#allocation4], %s1288_s19, %s1288_s19, %s1289_s20  }
 0x111   :  { %1285 = dma.done.wait [#allocation4], 36864  }
 0x112   :  { %1286 = vsyncadd [#allocation4], 4294930432 }
 0x113   :  { %1207 = vsyncpa [#allocation3], 1 }
 0x114   :  { %1208 = vsyncpa [#allocation6], 1 }
 0x115   :  { %1209 = vsyncpa [#allocation4], 1 }

</bundles_post_ra>
